<compile_context>
chip_gen: v7x
topology: tpu7x:2x2x1
jax: 0.10.0
libtpu: 0.0.40
codegen_flags: <defaults>
</compile_context>

<pallas_src>
import math

import jax
import jax.numpy as jnp
from jax import lax
from jax.experimental import pallas as pl
from jax.experimental.pallas import tpu as pltpu


def gru_chunk_kernel(gir_ref, giz_ref, gin_ref, h0_ref, wh_ref, bh_ref,
                     out_ref, hN_ref):
    """One (batch_block, time_chunk) grid point of the GRU recurrence.

    gir/giz/gin : (St, bb, H)  precomputed x_t @ W_i{r,z,n}.T + b_i{r,z,n}
    h0_ref      : (bb, H)      initial hidden for this batch block
    wh_ref      : (3, H, H)    W_h{r,z,n}.T  (pre-transposed, gate-stacked)
    bh_ref      : (3, 1, H)    b_h{r,z,n}
    out_ref     : (St, bb, H)  per-step hidden outputs for this chunk
    hN_ref      : (bb, H)      final hidden; doubles as the resident carry
    """
    c = pl.program_id(1)

    @pl.when(c == 0)
    def _init():
        hN_ref[...] = h0_ref[...]

    # Hoist the (small) recurrent weights into registers once per chunk.
    w_r, w_z, w_n = wh_ref[0], wh_ref[1], wh_ref[2]      # (H, H) each
    b_r, b_z, b_n = bh_ref[0], bh_ref[1], bh_ref[2]      # (1, H) each

    steps = out_ref.shape[0]

    def step(t, h):
        gh_r = jnp.dot(h, w_r, preferred_element_type=jnp.float32) + b_r
        gh_z = jnp.dot(h, w_z, preferred_element_type=jnp.float32) + b_z
        gh_n = jnp.dot(h, w_n, preferred_element_type=jnp.float32) + b_n
        r = jax.nn.sigmoid(gir_ref[t] + gh_r)
        z = jax.nn.sigmoid(giz_ref[t] + gh_z)
        n = jnp.tanh(gin_ref[t] + r * gh_n)
        h_new = (1.0 - z) * n + z * h                    # (bb, H)
        out_ref[t] = h_new                               # per-step output
        return h_new

    h_final = lax.fori_loop(0, steps, step, hN_ref[...], unroll=steps <= 16)
    hN_ref[...] = h_final                                # carry / final hidden


def _largest_divisor_leq(n, cap):
    for d in range(min(n, cap), 0, -1):
        if n % d == 0:
            return d
    return 1


def word_encoder(prep, words, h0=None):
    """words: int32 (B, S). Returns (output (B, S, H), hidden (B, H))."""
    B, S = words.shape
    H = prep["hidden_size"]
    if h0 is None:
        h0 = jnp.zeros((B, H), jnp.float32)
    h0 = h0.astype(jnp.float32)

    # Hoisted input path: embedding gather + input projection + input bias,
    # folded into one table lookup (glue gather outside the kernel).
    # gate_table: (3, n_tokens, H); words.T: (S, B)  ->  (3, S, B, H)
    gi = jnp.take(prep["gate_table"], words.T, axis=1)
    gi_r, gi_z, gi_n = gi[0], gi[1], gi[2]               # (S, B, H) each, f32

    # Batch blocking (parallel axis) and time chunking (arbitrary axis).
    bb = _largest_divisor_leq(B, 64)
    # Keep per-chunk gate/output blocks comfortably inside VMEM
    # (3 gate inputs + 1 output, double-buffered, (8,128)-padded tiles).
    padded_step_bytes = 4 * max(bb, 8) * max(H, 128)
    st_cap = max(1, (4 * 1024 * 1024) // (8 * padded_step_bytes))
    St = _largest_divisor_leq(S, st_cap)
    nb, nc = B // bb, S // St

    seq_spec = pl.BlockSpec((St, bb, H), lambda b, c: (c, b, 0))
    vec_spec = pl.BlockSpec((bb, H), lambda b, c: (b, 0))

    grid_spec = pltpu.PrefetchScalarGridSpec(
        num_scalar_prefetch=0,
        grid=(nb, nc),
        in_specs=[
            seq_spec, seq_spec, seq_spec,                        # gi_r, gi_z, gi_n
            vec_spec,                                            # h0
            pl.BlockSpec((3, H, H), lambda b, c: (0, 0, 0)),     # wh (resident)
            pl.BlockSpec((3, 1, H), lambda b, c: (0, 0, 0)),     # bh (resident)
        ],
        out_specs=[
            seq_spec,                                            # (S, B, H) outputs
            vec_spec,                                            # (B, H) final hidden
        ],
    )

    out_seq, hN = pl.pallas_call(
        gru_chunk_kernel,
        out_shape=(
            jax.ShapeDtypeStruct((S, B, H), jnp.float32),
            jax.ShapeDtypeStruct((B, H), jnp.float32),
        ),
        grid_spec=grid_spec,
        compiler_params=pltpu.CompilerParams(
            dimension_semantics=("parallel", "arbitrary")),
    )(gi_r, gi_z, gi_n, h0, prep["wh"], prep["bh"])

    output = jnp.transpose(out_seq, (1, 0, 2))           # batch_first: (B, S, H)
    return output, hN


def make_params(key, n_tokens, embedding_dim, hidden_size):
    """Raw parameters matching PyTorch nn.Embedding + nn.GRU (1 layer)."""
    ks = jax.random.split(key, 5)
    s = 1.0 / math.sqrt(hidden_size)

    def u(k, shape):
        return jax.random.uniform(k, shape, jnp.float32, -s, s)

    return {
        "embedding": jax.random.normal(ks[0], (n_tokens, embedding_dim), jnp.float32),
        # GRU: weight_ih_l0 (3H, E), weight_hh_l0 (3H, H), biases (3H,); gate order r,z,n
        "w_ih": u(ks[1], (3 * hidden_size, embedding_dim)),
        "w_hh": u(ks[2], (3 * hidden_size, hidden_size)),
        "b_ih": u(ks[3], (3 * hidden_size,)),
        "b_hh": u(ks[4], (3 * hidden_size,)),
    }


def prepare_params(params):
    """One-time layout prep: fold embedding + input projection + input bias into
    a per-token gate table; pre-transpose / gate-split the hidden weights."""
    H = params["w_hh"].shape[1]
    n_tokens = params["embedding"].shape[0]

    # row t of table = embedding[t] @ W_ih.T + b_ih, then gate-separate (r, z, n)
    table = params["embedding"] @ params["w_ih"].T + params["b_ih"]   # (n_tokens, 3H)
    gate_table = jnp.transpose(
        table.reshape(n_tokens, 3, H), (1, 0, 2)).astype(jnp.float32)  # (3, n_tokens, H)

    wh = jnp.stack([params["w_hh"][0:H].T,
                    params["w_hh"][H:2 * H].T,
                    params["w_hh"][2 * H:3 * H].T]).astype(jnp.float32)   # (3, H, H)
    bh = params["b_hh"].reshape(3, 1, H).astype(jnp.float32)              # (3, 1, H)

    return {"gate_table": gate_table, "wh": wh, "bh": bh, "hidden_size": H}


def reference(params, words, h0):
    """Pure-JAX mirror of the PyTorch forward, for verification."""
    emb = params["embedding"][words]                  # (B, S, E)
    H = params["w_hh"].shape[1]

    def step(h, x_t):
        gi = x_t @ params["w_ih"].T + params["b_ih"]
        gh = h @ params["w_hh"].T + params["b_hh"]
        r = jax.nn.sigmoid(gi[:, :H] + gh[:, :H])
        z = jax.nn.sigmoid(gi[:, H:2 * H] + gh[:, H:2 * H])
        n = jnp.tanh(gi[:, 2 * H:] + r * gh[:, 2 * H:])
        h_new = (1.0 - z) * n + z * h
        return h_new, h_new

    hN, outs = jax.lax.scan(step, h0, jnp.swapaxes(emb, 0, 1))
    return jnp.swapaxes(outs, 0, 1), hN               # (B, S, H), (B, H)


if __name__ == "__main__":
    n_tokens, embedding_dim, hidden_size = 16, 8, 32
    B, S = 2, 8

    key = jax.random.PRNGKey(0)
    pkey, wkey, hkey = jax.random.split(key, 3)

    params = make_params(pkey, n_tokens, embedding_dim, hidden_size)
    prep = prepare_params(params)

    words = jax.random.randint(wkey, (B, S), 0, n_tokens, dtype=jnp.int32)
    h0 = jax.random.normal(hkey, (B, hidden_size), jnp.float32)   # "hidden_start"

    out, hN = word_encoder(prep, words, h0)
    jax.block_until_ready((out, hN))

    ref_out, ref_h = reference(params, words, h0)
    assert out.shape == (B, S, hidden_size) and hN.shape == (B, hidden_size)
    assert jnp.allclose(out, ref_out, atol=1e-5, rtol=1e-5), \
        float(jnp.max(jnp.abs(out - ref_out)))
    assert jnp.allclose(hN, ref_h, atol=1e-5, rtol=1e-5), \
        float(jnp.max(jnp.abs(hN - ref_h)))

    print("KERNEL_OK")
</pallas_src>

<mosaic_0001>
module attributes {stable_mosaic.version = 11 : i64} {
  func.func @gru_chunk_kernel(%arg0: i32, %arg1: i32, %arg2: memref<8x2x32xf32, #tpu.memory_space<vmem>>, %arg3: memref<8x2x32xf32, #tpu.memory_space<vmem>>, %arg4: memref<8x2x32xf32, #tpu.memory_space<vmem>>, %arg5: memref<2x32xf32, #tpu.memory_space<vmem>>, %arg6: memref<3x32x32xf32, #tpu.memory_space<vmem>>, %arg7: memref<3x1x32xf32, #tpu.memory_space<vmem>>, %arg8: memref<8x2x32xf32, #tpu.memory_space<vmem>>, %arg9: memref<2x32xf32, #tpu.memory_space<vmem>>) attributes {dimension_semantics = [#tpu.dimension_semantics<parallel>, #tpu.dimension_semantics<arbitrary>], iteration_bounds = array<i64: 1, 1>, scalar_prefetch = 0 : i64, scratch_operands = 0 : i64, tpu.core_type = #tpu.core_type<tc>, window_params = [{transform_indices = @transform_0, window_bounds = array<i64: 8, 2, 32>}, {transform_indices = @transform_1, window_bounds = array<i64: 8, 2, 32>}, {transform_indices = @transform_2, window_bounds = array<i64: 8, 2, 32>}, {transform_indices = @transform_3, window_bounds = array<i64: 2, 32>}, {pipeline_mode = #tpu.pipeline_mode<synchronous>, transform_indices = @transform_4, window_bounds = array<i64: 3, 32, 32>}, {pipeline_mode = #tpu.pipeline_mode<synchronous>, transform_indices = @transform_5, window_bounds = array<i64: 3, 1, 32>}, {transform_indices = @transform_6, window_bounds = array<i64: 8, 2, 32>}, {transform_indices = @transform_7, window_bounds = array<i64: 2, 32>}]} {
    %c0_i32 = arith.constant 0 : i32
    %0 = arith.cmpi eq, %arg1, %c0_i32 : i32
    %1 = arith.extui %0 : i1 to i32
    %c0_i32_0 = arith.constant 0 : i32
    %2 = arith.cmpi ne, %1, %c0_i32_0 : i32
    scf.if %2 {
      %c0_132 = arith.constant 0 : index
      %c0_133 = arith.constant 0 : index
      %353 = vector.load %arg5[%c0_132, %c0_133] : memref<2x32xf32, #tpu.memory_space<vmem>>, vector<2x32xf32>
      %c0_134 = arith.constant 0 : index
      %c0_135 = arith.constant 0 : index
      %354 = vector.load %arg9[%c0_134, %c0_135] : memref<2x32xf32, #tpu.memory_space<vmem>>, vector<2x32xf32>
      tpu.vector_store %arg9[%c0_134, %c0_135], %353 {strides = array<i32>} : memref<2x32xf32, #tpu.memory_space<vmem>>, vector<2x32xf32>,
    } else {
    }
    %c0 = arith.constant 0 : index
    %c0_1 = arith.constant 0 : index
    %c0_2 = arith.constant 0 : index
    %3 = vector.load %arg6[%c0, %c0_1, %c0_2] : memref<3x32x32xf32, #tpu.memory_space<vmem>>, vector<1x32x32xf32>
    %4 = vector.shape_cast %3 : vector<1x32x32xf32> to vector<32x32xf32>
    %c1 = arith.constant 1 : index
    %c0_3 = arith.constant 0 : index
    %c0_4 = arith.constant 0 : index
    %5 = vector.load %arg6[%c1, %c0_3, %c0_4] : memref<3x32x32xf32, #tpu.memory_space<vmem>>, vector<1x32x32xf32>
    %6 = vector.shape_cast %5 : vector<1x32x32xf32> to vector<32x32xf32>
    %c2 = arith.constant 2 : index
    %c0_5 = arith.constant 0 : index
    %c0_6 = arith.constant 0 : index
    %7 = vector.load %arg6[%c2, %c0_5, %c0_6] : memref<3x32x32xf32, #tpu.memory_space<vmem>>, vector<1x32x32xf32>
    %8 = vector.shape_cast %7 : vector<1x32x32xf32> to vector<32x32xf32>
    %c0_7 = arith.constant 0 : index
    %c0_8 = arith.constant 0 : index
    %c0_9 = arith.constant 0 : index
    %9 = vector.load %arg7[%c0_7, %c0_8, %c0_9] : memref<3x1x32xf32, #tpu.memory_space<vmem>>, vector<1x1x32xf32>
    %10 = vector.shape_cast %9 : vector<1x1x32xf32> to vector<1x32xf32>
    %c1_10 = arith.constant 1 : index
    %c0_11 = arith.constant 0 : index
    %c0_12 = arith.constant 0 : index
    %11 = vector.load %arg7[%c1_10, %c0_11, %c0_12] : memref<3x1x32xf32, #tpu.memory_space<vmem>>, vector<1x1x32xf32>
    %12 = vector.shape_cast %11 : vector<1x1x32xf32> to vector<1x32xf32>
    %c2_13 = arith.constant 2 : index
    %c0_14 = arith.constant 0 : index
    %c0_15 = arith.constant 0 : index
    %13 = vector.load %arg7[%c2_13, %c0_14, %c0_15] : memref<3x1x32xf32, #tpu.memory_space<vmem>>, vector<1x1x32xf32>
    %14 = vector.shape_cast %13 : vector<1x1x32xf32> to vector<1x32xf32>
    %c0_16 = arith.constant 0 : index
    %c0_17 = arith.constant 0 : index
    %15 = vector.load %arg9[%c0_16, %c0_17] : memref<2x32xf32, #tpu.memory_space<vmem>>, vector<2x32xf32>
    %c0_i32_18 = arith.constant 0 : i32
    %cst = arith.constant dense<0.000000e+00> : vector<2x32xf32>
    %16 = tpu.matmul %15, %4, %cst {dimension_numbers = #tpu.dot_dimension_numbers<[1], [0], [0], [1], [0, 0, 1, 1], [], []>} : vector<2x32xf32>, vector<32x32xf32>, vector<2x32xf32> -> vector<2x32xf32>
    %17 = vector.broadcast %10 : vector<1x32xf32> to vector<2x32xf32>
    %18 = arith.addf %16, %17 : vector<2x32xf32>
    %cst_19 = arith.constant dense<0.000000e+00> : vector<2x32xf32>
    %19 = tpu.matmul %15, %6, %cst_19 {dimension_numbers = #tpu.dot_dimension_numbers<[1], [0], [0], [1], [0, 0, 1, 1], [], []>} : vector<2x32xf32>, vector<32x32xf32>, vector<2x32xf32> -> vector<2x32xf32>
    %20 = vector.broadcast %12 : vector<1x32xf32> to vector<2x32xf32>
    %21 = arith.addf %19, %20 : vector<2x32xf32>
    %cst_20 = arith.constant dense<0.000000e+00> : vector<2x32xf32>
    %22 = tpu.matmul %15, %8, %cst_20 {dimension_numbers = #tpu.dot_dimension_numbers<[1], [0], [0], [1], [0, 0, 1, 1], [], []>} : vector<2x32xf32>, vector<32x32xf32>, vector<2x32xf32> -> vector<2x32xf32>
    %23 = vector.broadcast %14 : vector<1x32xf32> to vector<2x32xf32>
    %24 = arith.addf %22, %23 : vector<2x32xf32>
    %25 = arith.index_cast %c0_i32_18 : i32 to index
    %c0_21 = arith.constant 0 : index
    %c0_22 = arith.constant 0 : index
    %26 = vector.load %arg2[%25, %c0_21, %c0_22] : memref<8x2x32xf32, #tpu.memory_space<vmem>>, vector<1x2x32xf32>
    %27 = vector.shape_cast %26 : vector<1x2x32xf32> to vector<2x32xf32>
    %28 = arith.addf %27, %18 : vector<2x32xf32>
    %29 = arith.negf %28 : vector<2x32xf32>
    %30 = math.exp %29 : vector<2x32xf32>
    %cst_23 = arith.constant 1.000000e+00 : f32
    %31 = vector.broadcast %cst_23 : f32 to vector<2x32xf32>
    %32 = arith.addf %31, %30 : vector<2x32xf32>
    %33 = arith.divf %31, %32 : vector<2x32xf32>
    %34 = arith.index_cast %c0_i32_18 : i32 to index
    %c0_24 = arith.constant 0 : index
    %c0_25 = arith.constant 0 : index
    %35 = vector.load %arg3[%34, %c0_24, %c0_25] : memref<8x2x32xf32, #tpu.memory_space<vmem>>, vector<1x2x32xf32>
    %36 = vector.shape_cast %35 : vector<1x2x32xf32> to vector<2x32xf32>
    %37 = arith.addf %36, %21 : vector<2x32xf32>
    %38 = arith.negf %37 : vector<2x32xf32>
    %39 = math.exp %38 : vector<2x32xf32>
    %cst_26 = arith.constant 1.000000e+00 : f32
    %40 = vector.broadcast %cst_26 : f32 to vector<2x32xf32>
    %41 = arith.addf %40, %39 : vector<2x32xf32>
    %42 = arith.divf %40, %41 : vector<2x32xf32>
    %43 = arith.index_cast %c0_i32_18 : i32 to index
    %c0_27 = arith.constant 0 : index
    %c0_28 = arith.constant 0 : index
    %44 = vector.load %arg4[%43, %c0_27, %c0_28] : memref<8x2x32xf32, #tpu.memory_space<vmem>>, vector<1x2x32xf32>
    %45 = vector.shape_cast %44 : vector<1x2x32xf32> to vector<2x32xf32>
    %46 = arith.mulf %33, %24 : vector<2x32xf32>
    %47 = arith.addf %45, %46 : vector<2x32xf32>
    %48 = math.tanh %47 : vector<2x32xf32>
    %cst_29 = arith.constant 1.000000e+00 : f32
    %49 = vector.broadcast %cst_29 : f32 to vector<2x32xf32>
    %50 = arith.subf %49, %42 : vector<2x32xf32>
    %51 = arith.mulf %50, %48 : vector<2x32xf32>
    %52 = arith.mulf %42, %15 : vector<2x32xf32>
    %53 = arith.addf %51, %52 : vector<2x32xf32>
    %54 = arith.index_cast %c0_i32_18 : i32 to index
    %c0_30 = arith.constant 0 : index
    %c0_31 = arith.constant 0 : index
    %55 = vector.load %arg8[%54, %c0_30, %c0_31] : memref<8x2x32xf32, #tpu.memory_space<vmem>>, vector<1x2x32xf32>
    %56 = vector.shape_cast %55 : vector<1x2x32xf32> to vector<2x32xf32>
    %57 = vector.shape_cast %53 : vector<2x32xf32> to vector<1x2x32xf32>
    tpu.vector_store %arg8[%54, %c0_30, %c0_31], %57 {strides = array<i32>} : memref<8x2x32xf32, #tpu.memory_space<vmem>>, vector<1x2x32xf32>,
    %c1_i32 = arith.constant 1 : i32
    %cst_32 = arith.constant dense<0.000000e+00> : vector<2x32xf32>
    %58 = tpu.matmul %53, %4, %cst_32 {dimension_numbers = #tpu.dot_dimension_numbers<[1], [0], [0], [1], [0, 0, 1, 1], [], []>} : vector<2x32xf32>, vector<32x32xf32>, vector<2x32xf32> -> vector<2x32xf32>
    %59 = vector.broadcast %10 : vector<1x32xf32> to vector<2x32xf32>
    %60 = arith.addf %58, %59 : vector<2x32xf32>
    %cst_33 = arith.constant dense<0.000000e+00> : vector<2x32xf32>
    %61 = tpu.matmul %53, %6, %cst_33 {dimension_numbers = #tpu.dot_dimension_numbers<[1], [0], [0], [1], [0, 0, 1, 1], [], []>} : vector<2x32xf32>, vector<32x32xf32>, vector<2x32xf32> -> vector<2x32xf32>
    %62 = vector.broadcast %12 : vector<1x32xf32> to vector<2x32xf32>
    %63 = arith.addf %61, %62 : vector<2x32xf32>
    %cst_34 = arith.constant dense<0.000000e+00> : vector<2x32xf32>
    %64 = tpu.matmul %53, %8, %cst_34 {dimension_numbers = #tpu.dot_dimension_numbers<[1], [0], [0], [1], [0, 0, 1, 1], [], []>} : vector<2x32xf32>, vector<32x32xf32>, vector<2x32xf32> -> vector<2x32xf32>
    %65 = vector.broadcast %14 : vector<1x32xf32> to vector<2x32xf32>
    %66 = arith.addf %64, %65 : vector<2x32xf32>
    %67 = arith.index_cast %c1_i32 : i32 to index
    %c0_35 = arith.constant 0 : index
    %c0_36 = arith.constant 0 : index
    %68 = vector.load %arg2[%67, %c0_35, %c0_36] : memref<8x2x32xf32, #tpu.memory_space<vmem>>, vector<1x2x32xf32>
    %69 = vector.shape_cast %68 : vector<1x2x32xf32> to vector<2x32xf32>
    %70 = arith.addf %69, %60 : vector<2x32xf32>
    %71 = arith.negf %70 : vector<2x32xf32>
    %72 = math.exp %71 : vector<2x32xf32>
    %cst_37 = arith.constant 1.000000e+00 : f32
    %73 = vector.broadcast %cst_37 : f32 to vector<2x32xf32>
    %74 = arith.addf %73, %72 : vector<2x32xf32>
    %75 = arith.divf %73, %74 : vector<2x32xf32>
    %76 = arith.index_cast %c1_i32 : i32 to index
    %c0_38 = arith.constant 0 : index
    %c0_39 = arith.constant 0 : index
    %77 = vector.load %arg3[%76, %c0_38, %c0_39] : memref<8x2x32xf32, #tpu.memory_space<vmem>>, vector<1x2x32xf32>
    %78 = vector.shape_cast %77 : vector<1x2x32xf32> to vector<2x32xf32>
    %79 = arith.addf %78, %63 : vector<2x32xf32>
    %80 = arith.negf %79 : vector<2x32xf32>
    %81 = math.exp %80 : vector<2x32xf32>
    %cst_40 = arith.constant 1.000000e+00 : f32
    %82 = vector.broadcast %cst_40 : f32 to vector<2x32xf32>
    %83 = arith.addf %82, %81 : vector<2x32xf32>
    %84 = arith.divf %82, %83 : vector<2x32xf32>
    %85 = arith.index_cast %c1_i32 : i32 to index
    %c0_41 = arith.constant 0 : index
    %c0_42 = arith.constant 0 : index
    %86 = vector.load %arg4[%85, %c0_41, %c0_42] : memref<8x2x32xf32, #tpu.memory_space<vmem>>, vector<1x2x32xf32>
    %87 = vector.shape_cast %86 : vector<1x2x32xf32> to vector<2x32xf32>
    %88 = arith.mulf %75, %66 : vector<2x32xf32>
    %89 = arith.addf %87, %88 : vector<2x32xf32>
    %90 = math.tanh %89 : vector<2x32xf32>
    %cst_43 = arith.constant 1.000000e+00 : f32
    %91 = vector.broadcast %cst_43 : f32 to vector<2x32xf32>
    %92 = arith.subf %91, %84 : vector<2x32xf32>
    %93 = arith.mulf %92, %90 : vector<2x32xf32>
    %94 = arith.mulf %84, %53 : vector<2x32xf32>
    %95 = arith.addf %93, %94 : vector<2x32xf32>
    %96 = arith.index_cast %c1_i32 : i32 to index
    %c0_44 = arith.constant 0 : index
    %c0_45 = arith.constant 0 : index
    %97 = vector.load %arg8[%96, %c0_44, %c0_45] : memref<8x2x32xf32, #tpu.memory_space<vmem>>, vector<1x2x32xf32>
    %98 = vector.shape_cast %97 : vector<1x2x32xf32> to vector<2x32xf32>
    %99 = vector.shape_cast %95 : vector<2x32xf32> to vector<1x2x32xf32>
    tpu.vector_store %arg8[%96, %c0_44, %c0_45], %99 {strides = array<i32>} : memref<8x2x32xf32, #tpu.memory_space<vmem>>, vector<1x2x32xf32>,
    %c2_i32 = arith.constant 2 : i32
    %cst_46 = arith.constant dense<0.000000e+00> : vector<2x32xf32>
    %100 = tpu.matmul %95, %4, %cst_46 {dimension_numbers = #tpu.dot_dimension_numbers<[1], [0], [0], [1], [0, 0, 1, 1], [], []>} : vector<2x32xf32>, vector<32x32xf32>, vector<2x32xf32> -> vector<2x32xf32>
    %101 = vector.broadcast %10 : vector<1x32xf32> to vector<2x32xf32>
    %102 = arith.addf %100, %101 : vector<2x32xf32>
    %cst_47 = arith.constant dense<0.000000e+00> : vector<2x32xf32>
    %103 = tpu.matmul %95, %6, %cst_47 {dimension_numbers = #tpu.dot_dimension_numbers<[1], [0], [0], [1], [0, 0, 1, 1], [], []>} : vector<2x32xf32>, vector<32x32xf32>, vector<2x32xf32> -> vector<2x32xf32>
    %104 = vector.broadcast %12 : vector<1x32xf32> to vector<2x32xf32>
    %105 = arith.addf %103, %104 : vector<2x32xf32>
    %cst_48 = arith.constant dense<0.000000e+00> : vector<2x32xf32>
    %106 = tpu.matmul %95, %8, %cst_48 {dimension_numbers = #tpu.dot_dimension_numbers<[1], [0], [0], [1], [0, 0, 1, 1], [], []>} : vector<2x32xf32>, vector<32x32xf32>, vector<2x32xf32> -> vector<2x32xf32>
    %107 = vector.broadcast %14 : vector<1x32xf32> to vector<2x32xf32>
    %108 = arith.addf %106, %107 : vector<2x32xf32>
    %109 = arith.index_cast %c2_i32 : i32 to index
    %c0_49 = arith.constant 0 : index
    %c0_50 = arith.constant 0 : index
    %110 = vector.load %arg2[%109, %c0_49, %c0_50] : memref<8x2x32xf32, #tpu.memory_space<vmem>>, vector<1x2x32xf32>
    %111 = vector.shape_cast %110 : vector<1x2x32xf32> to vector<2x32xf32>
    %112 = arith.addf %111, %102 : vector<2x32xf32>
    %113 = arith.negf %112 : vector<2x32xf32>
    %114 = math.exp %113 : vector<2x32xf32>
    %cst_51 = arith.constant 1.000000e+00 : f32
    %115 = vector.broadcast %cst_51 : f32 to vector<2x32xf32>
    %116 = arith.addf %115, %114 : vector<2x32xf32>
    %117 = arith.divf %115, %116 : vector<2x32xf32>
    %118 = arith.index_cast %c2_i32 : i32 to index
    %c0_52 = arith.constant 0 : index
    %c0_53 = arith.constant 0 : index
    %119 = vector.load %arg3[%118, %c0_52, %c0_53] : memref<8x2x32xf32, #tpu.memory_space<vmem>>, vector<1x2x32xf32>
    %120 = vector.shape_cast %119 : vector<1x2x32xf32> to vector<2x32xf32>
    %121 = arith.addf %120, %105 : vector<2x32xf32>
    %122 = arith.negf %121 : vector<2x32xf32>
    %123 = math.exp %122 : vector<2x32xf32>
    %cst_54 = arith.constant 1.000000e+00 : f32
    %124 = vector.broadcast %cst_54 : f32 to vector<2x32xf32>
    %125 = arith.addf %124, %123 : vector<2x32xf32>
    %126 = arith.divf %124, %125 : vector<2x32xf32>
    %127 = arith.index_cast %c2_i32 : i32 to index
    %c0_55 = arith.constant 0 : index
    %c0_56 = arith.constant 0 : index
    %128 = vector.load %arg4[%127, %c0_55, %c0_56] : memref<8x2x32xf32, #tpu.memory_space<vmem>>, vector<1x2x32xf32>
    %129 = vector.shape_cast %128 : vector<1x2x32xf32> to vector<2x32xf32>
    %130 = arith.mulf %117, %108 : vector<2x32xf32>
    %131 = arith.addf %129, %130 : vector<2x32xf32>
    %132 = math.tanh %131 : vector<2x32xf32>
    %cst_57 = arith.constant 1.000000e+00 : f32
    %133 = vector.broadcast %cst_57 : f32 to vector<2x32xf32>
    %134 = arith.subf %133, %126 : vector<2x32xf32>
    %135 = arith.mulf %134, %132 : vector<2x32xf32>
    %136 = arith.mulf %126, %95 : vector<2x32xf32>
    %137 = arith.addf %135, %136 : vector<2x32xf32>
    %138 = arith.index_cast %c2_i32 : i32 to index
    %c0_58 = arith.constant 0 : index
    %c0_59 = arith.constant 0 : index
    %139 = vector.load %arg8[%138, %c0_58, %c0_59] : memref<8x2x32xf32, #tpu.memory_space<vmem>>, vector<1x2x32xf32>
    %140 = vector.shape_cast %139 : vector<1x2x32xf32> to vector<2x32xf32>
    %141 = vector.shape_cast %137 : vector<2x32xf32> to vector<1x2x32xf32>
    tpu.vector_store %arg8[%138, %c0_58, %c0_59], %141 {strides = array<i32>} : memref<8x2x32xf32, #tpu.memory_space<vmem>>, vector<1x2x32xf32>,
    %c3_i32 = arith.constant 3 : i32
    %cst_60 = arith.constant dense<0.000000e+00> : vector<2x32xf32>
    %142 = tpu.matmul %137, %4, %cst_60 {dimension_numbers = #tpu.dot_dimension_numbers<[1], [0], [0], [1], [0, 0, 1, 1], [], []>} : vector<2x32xf32>, vector<32x32xf32>, vector<2x32xf32> -> vector<2x32xf32>
    %143 = vector.broadcast %10 : vector<1x32xf32> to vector<2x32xf32>
    %144 = arith.addf %142, %143 : vector<2x32xf32>
    %cst_61 = arith.constant dense<0.000000e+00> : vector<2x32xf32>
    %145 = tpu.matmul %137, %6, %cst_61 {dimension_numbers = #tpu.dot_dimension_numbers<[1], [0], [0], [1], [0, 0, 1, 1], [], []>} : vector<2x32xf32>, vector<32x32xf32>, vector<2x32xf32> -> vector<2x32xf32>
    %146 = vector.broadcast %12 : vector<1x32xf32> to vector<2x32xf32>
    %147 = arith.addf %145, %146 : vector<2x32xf32>
    %cst_62 = arith.constant dense<0.000000e+00> : vector<2x32xf32>
    %148 = tpu.matmul %137, %8, %cst_62 {dimension_numbers = #tpu.dot_dimension_numbers<[1], [0], [0], [1], [0, 0, 1, 1], [], []>} : vector<2x32xf32>, vector<32x32xf32>, vector<2x32xf32> -> vector<2x32xf32>
    %149 = vector.broadcast %14 : vector<1x32xf32> to vector<2x32xf32>
    %150 = arith.addf %148, %149 : vector<2x32xf32>
    %151 = arith.index_cast %c3_i32 : i32 to index
    %c0_63 = arith.constant 0 : index
    %c0_64 = arith.constant 0 : index
    %152 = vector.load %arg2[%151, %c0_63, %c0_64] : memref<8x2x32xf32, #tpu.memory_space<vmem>>, vector<1x2x32xf32>
    %153 = vector.shape_cast %152 : vector<1x2x32xf32> to vector<2x32xf32>
    %154 = arith.addf %153, %144 : vector<2x32xf32>
    %155 = arith.negf %154 : vector<2x32xf32>
    %156 = math.exp %155 : vector<2x32xf32>
    %cst_65 = arith.constant 1.000000e+00 : f32
    %157 = vector.broadcast %cst_65 : f32 to vector<2x32xf32>
    %158 = arith.addf %157, %156 : vector<2x32xf32>
    %159 = arith.divf %157, %158 : vector<2x32xf32>
    %160 = arith.index_cast %c3_i32 : i32 to index
    %c0_66 = arith.constant 0 : index
    %c0_67 = arith.constant 0 : index
    %161 = vector.load %arg3[%160, %c0_66, %c0_67] : memref<8x2x32xf32, #tpu.memory_space<vmem>>, vector<1x2x32xf32>
    %162 = vector.shape_cast %161 : vector<1x2x32xf32> to vector<2x32xf32>
    %163 = arith.addf %162, %147 : vector<2x32xf32>
    %164 = arith.negf %163 : vector<2x32xf32>
    %165 = math.exp %164 : vector<2x32xf32>
    %cst_68 = arith.constant 1.000000e+00 : f32
    %166 = vector.broadcast %cst_68 : f32 to vector<2x32xf32>
    %167 = arith.addf %166, %165 : vector<2x32xf32>
    %168 = arith.divf %166, %167 : vector<2x32xf32>
    %169 = arith.index_cast %c3_i32 : i32 to index
    %c0_69 = arith.constant 0 : index
    %c0_70 = arith.constant 0 : index
    %170 = vector.load %arg4[%169, %c0_69, %c0_70] : memref<8x2x32xf32, #tpu.memory_space<vmem>>, vector<1x2x32xf32>
    %171 = vector.shape_cast %170 : vector<1x2x32xf32> to vector<2x32xf32>
    %172 = arith.mulf %159, %150 : vector<2x32xf32>
    %173 = arith.addf %171, %172 : vector<2x32xf32>
    %174 = math.tanh %173 : vector<2x32xf32>
    %cst_71 = arith.constant 1.000000e+00 : f32
    %175 = vector.broadcast %cst_71 : f32 to vector<2x32xf32>
    %176 = arith.subf %175, %168 : vector<2x32xf32>
    %177 = arith.mulf %176, %174 : vector<2x32xf32>
    %178 = arith.mulf %168, %137 : vector<2x32xf32>
    %179 = arith.addf %177, %178 : vector<2x32xf32>
    %180 = arith.index_cast %c3_i32 : i32 to index
    %c0_72 = arith.constant 0 : index
    %c0_73 = arith.constant 0 : index
    %181 = vector.load %arg8[%180, %c0_72, %c0_73] : memref<8x2x32xf32, #tpu.memory_space<vmem>>, vector<1x2x32xf32>
    %182 = vector.shape_cast %181 : vector<1x2x32xf32> to vector<2x32xf32>
    %183 = vector.shape_cast %179 : vector<2x32xf32> to vector<1x2x32xf32>
    tpu.vector_store %arg8[%180, %c0_72, %c0_73], %183 {strides = array<i32>} : memref<8x2x32xf32, #tpu.memory_space<vmem>>, vector<1x2x32xf32>,
    %c4_i32 = arith.constant 4 : i32
    %cst_74 = arith.constant dense<0.000000e+00> : vector<2x32xf32>
    %184 = tpu.matmul %179, %4, %cst_74 {dimension_numbers = #tpu.dot_dimension_numbers<[1], [0], [0], [1], [0, 0, 1, 1], [], []>} : vector<2x32xf32>, vector<32x32xf32>, vector<2x32xf32> -> vector<2x32xf32>
    %185 = vector.broadcast %10 : vector<1x32xf32> to vector<2x32xf32>
    %186 = arith.addf %184, %185 : vector<2x32xf32>
    %cst_75 = arith.constant dense<0.000000e+00> : vector<2x32xf32>
    %187 = tpu.matmul %179, %6, %cst_75 {dimension_numbers = #tpu.dot_dimension_numbers<[1], [0], [0], [1], [0, 0, 1, 1], [], []>} : vector<2x32xf32>, vector<32x32xf32>, vector<2x32xf32> -> vector<2x32xf32>
    %188 = vector.broadcast %12 : vector<1x32xf32> to vector<2x32xf32>
    %189 = arith.addf %187, %188 : vector<2x32xf32>
    %cst_76 = arith.constant dense<0.000000e+00> : vector<2x32xf32>
    %190 = tpu.matmul %179, %8, %cst_76 {dimension_numbers = #tpu.dot_dimension_numbers<[1], [0], [0], [1], [0, 0, 1, 1], [], []>} : vector<2x32xf32>, vector<32x32xf32>, vector<2x32xf32> -> vector<2x32xf32>
    %191 = vector.broadcast %14 : vector<1x32xf32> to vector<2x32xf32>
    %192 = arith.addf %190, %191 : vector<2x32xf32>
    %193 = arith.index_cast %c4_i32 : i32 to index
    %c0_77 = arith.constant 0 : index
    %c0_78 = arith.constant 0 : index
    %194 = vector.load %arg2[%193, %c0_77, %c0_78] : memref<8x2x32xf32, #tpu.memory_space<vmem>>, vector<1x2x32xf32>
    %195 = vector.shape_cast %194 : vector<1x2x32xf32> to vector<2x32xf32>
    %196 = arith.addf %195, %186 : vector<2x32xf32>
    %197 = arith.negf %196 : vector<2x32xf32>
    %198 = math.exp %197 : vector<2x32xf32>
    %cst_79 = arith.constant 1.000000e+00 : f32
    %199 = vector.broadcast %cst_79 : f32 to vector<2x32xf32>
    %200 = arith.addf %199, %198 : vector<2x32xf32>
    %201 = arith.divf %199, %200 : vector<2x32xf32>
    %202 = arith.index_cast %c4_i32 : i32 to index
    %c0_80 = arith.constant 0 : index
    %c0_81 = arith.constant 0 : index
    %203 = vector.load %arg3[%202, %c0_80, %c0_81] : memref<8x2x32xf32, #tpu.memory_space<vmem>>, vector<1x2x32xf32>
    %204 = vector.shape_cast %203 : vector<1x2x32xf32> to vector<2x32xf32>
    %205 = arith.addf %204, %189 : vector<2x32xf32>
    %206 = arith.negf %205 : vector<2x32xf32>
    %207 = math.exp %206 : vector<2x32xf32>
    %cst_82 = arith.constant 1.000000e+00 : f32
    %208 = vector.broadcast %cst_82 : f32 to vector<2x32xf32>
    %209 = arith.addf %208, %207 : vector<2x32xf32>
    %210 = arith.divf %208, %209 : vector<2x32xf32>
    %211 = arith.index_cast %c4_i32 : i32 to index
    %c0_83 = arith.constant 0 : index
    %c0_84 = arith.constant 0 : index
    %212 = vector.load %arg4[%211, %c0_83, %c0_84] : memref<8x2x32xf32, #tpu.memory_space<vmem>>, vector<1x2x32xf32>
    %213 = vector.shape_cast %212 : vector<1x2x32xf32> to vector<2x32xf32>
    %214 = arith.mulf %201, %192 : vector<2x32xf32>
    %215 = arith.addf %213, %214 : vector<2x32xf32>
    %216 = math.tanh %215 : vector<2x32xf32>
    %cst_85 = arith.constant 1.000000e+00 : f32
    %217 = vector.broadcast %cst_85 : f32 to vector<2x32xf32>
    %218 = arith.subf %217, %210 : vector<2x32xf32>
    %219 = arith.mulf %218, %216 : vector<2x32xf32>
    %220 = arith.mulf %210, %179 : vector<2x32xf32>
    %221 = arith.addf %219, %220 : vector<2x32xf32>
    %222 = arith.index_cast %c4_i32 : i32 to index
    %c0_86 = arith.constant 0 : index
    %c0_87 = arith.constant 0 : index
    %223 = vector.load %arg8[%222, %c0_86, %c0_87] : memref<8x2x32xf32, #tpu.memory_space<vmem>>, vector<1x2x32xf32>
    %224 = vector.shape_cast %223 : vector<1x2x32xf32> to vector<2x32xf32>
    %225 = vector.shape_cast %221 : vector<2x32xf32> to vector<1x2x32xf32>
    tpu.vector_store %arg8[%222, %c0_86, %c0_87], %225 {strides = array<i32>} : memref<8x2x32xf32, #tpu.memory_space<vmem>>, vector<1x2x32xf32>,
    %c5_i32 = arith.constant 5 : i32
    %cst_88 = arith.constant dense<0.000000e+00> : vector<2x32xf32>
    %226 = tpu.matmul %221, %4, %cst_88 {dimension_numbers = #tpu.dot_dimension_numbers<[1], [0], [0], [1], [0, 0, 1, 1], [], []>} : vector<2x32xf32>, vector<32x32xf32>, vector<2x32xf32> -> vector<2x32xf32>
    %227 = vector.broadcast %10 : vector<1x32xf32> to vector<2x32xf32>
    %228 = arith.addf %226, %227 : vector<2x32xf32>
    %cst_89 = arith.constant dense<0.000000e+00> : vector<2x32xf32>
    %229 = tpu.matmul %221, %6, %cst_89 {dimension_numbers = #tpu.dot_dimension_numbers<[1], [0], [0], [1], [0, 0, 1, 1], [], []>} : vector<2x32xf32>, vector<32x32xf32>, vector<2x32xf32> -> vector<2x32xf32>
    %230 = vector.broadcast %12 : vector<1x32xf32> to vector<2x32xf32>
    %231 = arith.addf %229, %230 : vector<2x32xf32>
    %cst_90 = arith.constant dense<0.000000e+00> : vector<2x32xf32>
    %232 = tpu.matmul %221, %8, %cst_90 {dimension_numbers = #tpu.dot_dimension_numbers<[1], [0], [0], [1], [0, 0, 1, 1], [], []>} : vector<2x32xf32>, vector<32x32xf32>, vector<2x32xf32> -> vector<2x32xf32>
    %233 = vector.broadcast %14 : vector<1x32xf32> to vector<2x32xf32>
    %234 = arith.addf %232, %233 : vector<2x32xf32>
    %235 = arith.index_cast %c5_i32 : i32 to index
    %c0_91 = arith.constant 0 : index
    %c0_92 = arith.constant 0 : index
    %236 = vector.load %arg2[%235, %c0_91, %c0_92] : memref<8x2x32xf32, #tpu.memory_space<vmem>>, vector<1x2x32xf32>
    %237 = vector.shape_cast %236 : vector<1x2x32xf32> to vector<2x32xf32>
    %238 = arith.addf %237, %228 : vector<2x32xf32>
    %239 = arith.negf %238 : vector<2x32xf32>
    %240 = math.exp %239 : vector<2x32xf32>
    %cst_93 = arith.constant 1.000000e+00 : f32
    %241 = vector.broadcast %cst_93 : f32 to vector<2x32xf32>
    %242 = arith.addf %241, %240 : vector<2x32xf32>
    %243 = arith.divf %241, %242 : vector<2x32xf32>
    %244 = arith.index_cast %c5_i32 : i32 to index
    %c0_94 = arith.constant 0 : index
    %c0_95 = arith.constant 0 : index
    %245 = vector.load %arg3[%244, %c0_94, %c0_95] : memref<8x2x32xf32, #tpu.memory_space<vmem>>, vector<1x2x32xf32>
    %246 = vector.shape_cast %245 : vector<1x2x32xf32> to vector<2x32xf32>
    %247 = arith.addf %246, %231 : vector<2x32xf32>
    %248 = arith.negf %247 : vector<2x32xf32>
    %249 = math.exp %248 : vector<2x32xf32>
    %cst_96 = arith.constant 1.000000e+00 : f32
    %250 = vector.broadcast %cst_96 : f32 to vector<2x32xf32>
    %251 = arith.addf %250, %249 : vector<2x32xf32>
    %252 = arith.divf %250, %251 : vector<2x32xf32>
    %253 = arith.index_cast %c5_i32 : i32 to index
    %c0_97 = arith.constant 0 : index
    %c0_98 = arith.constant 0 : index
    %254 = vector.load %arg4[%253, %c0_97, %c0_98] : memref<8x2x32xf32, #tpu.memory_space<vmem>>, vector<1x2x32xf32>
    %255 = vector.shape_cast %254 : vector<1x2x32xf32> to vector<2x32xf32>
    %256 = arith.mulf %243, %234 : vector<2x32xf32>
    %257 = arith.addf %255, %256 : vector<2x32xf32>
    %258 = math.tanh %257 : vector<2x32xf32>
    %cst_99 = arith.constant 1.000000e+00 : f32
    %259 = vector.broadcast %cst_99 : f32 to vector<2x32xf32>
    %260 = arith.subf %259, %252 : vector<2x32xf32>
    %261 = arith.mulf %260, %258 : vector<2x32xf32>
    %262 = arith.mulf %252, %221 : vector<2x32xf32>
    %263 = arith.addf %261, %262 : vector<2x32xf32>
    %264 = arith.index_cast %c5_i32 : i32 to index
    %c0_100 = arith.constant 0 : index
    %c0_101 = arith.constant 0 : index
    %265 = vector.load %arg8[%264, %c0_100, %c0_101] : memref<8x2x32xf32, #tpu.memory_space<vmem>>, vector<1x2x32xf32>
    %266 = vector.shape_cast %265 : vector<1x2x32xf32> to vector<2x32xf32>
    %267 = vector.shape_cast %263 : vector<2x32xf32> to vector<1x2x32xf32>
    tpu.vector_store %arg8[%264, %c0_100, %c0_101], %267 {strides = array<i32>} : memref<8x2x32xf32, #tpu.memory_space<vmem>>, vector<1x2x32xf32>,
    %c6_i32 = arith.constant 6 : i32
    %cst_102 = arith.constant dense<0.000000e+00> : vector<2x32xf32>
    %268 = tpu.matmul %263, %4, %cst_102 {dimension_numbers = #tpu.dot_dimension_numbers<[1], [0], [0], [1], [0, 0, 1, 1], [], []>} : vector<2x32xf32>, vector<32x32xf32>, vector<2x32xf32> -> vector<2x32xf32>
    %269 = vector.broadcast %10 : vector<1x32xf32> to vector<2x32xf32>
    %270 = arith.addf %268, %269 : vector<2x32xf32>
    %cst_103 = arith.constant dense<0.000000e+00> : vector<2x32xf32>
    %271 = tpu.matmul %263, %6, %cst_103 {dimension_numbers = #tpu.dot_dimension_numbers<[1], [0], [0], [1], [0, 0, 1, 1], [], []>} : vector<2x32xf32>, vector<32x32xf32>, vector<2x32xf32> -> vector<2x32xf32>
    %272 = vector.broadcast %12 : vector<1x32xf32> to vector<2x32xf32>
    %273 = arith.addf %271, %272 : vector<2x32xf32>
    %cst_104 = arith.constant dense<0.000000e+00> : vector<2x32xf32>
    %274 = tpu.matmul %263, %8, %cst_104 {dimension_numbers = #tpu.dot_dimension_numbers<[1], [0], [0], [1], [0, 0, 1, 1], [], []>} : vector<2x32xf32>, vector<32x32xf32>, vector<2x32xf32> -> vector<2x32xf32>
    %275 = vector.broadcast %14 : vector<1x32xf32> to vector<2x32xf32>
    %276 = arith.addf %274, %275 : vector<2x32xf32>
    %277 = arith.index_cast %c6_i32 : i32 to index
    %c0_105 = arith.constant 0 : index
    %c0_106 = arith.constant 0 : index
    %278 = vector.load %arg2[%277, %c0_105, %c0_106] : memref<8x2x32xf32, #tpu.memory_space<vmem>>, vector<1x2x32xf32>
    %279 = vector.shape_cast %278 : vector<1x2x32xf32> to vector<2x32xf32>
    %280 = arith.addf %279, %270 : vector<2x32xf32>
    %281 = arith.negf %280 : vector<2x32xf32>
    %282 = math.exp %281 : vector<2x32xf32>
    %cst_107 = arith.constant 1.000000e+00 : f32
    %283 = vector.broadcast %cst_107 : f32 to vector<2x32xf32>
    %284 = arith.addf %283, %282 : vector<2x32xf32>
    %285 = arith.divf %283, %284 : vector<2x32xf32>
    %286 = arith.index_cast %c6_i32 : i32 to index
    %c0_108 = arith.constant 0 : index
    %c0_109 = arith.constant 0 : index
    %287 = vector.load %arg3[%286, %c0_108, %c0_109] : memref<8x2x32xf32, #tpu.memory_space<vmem>>, vector<1x2x32xf32>
    %288 = vector.shape_cast %287 : vector<1x2x32xf32> to vector<2x32xf32>
    %289 = arith.addf %288, %273 : vector<2x32xf32>
    %290 = arith.negf %289 : vector<2x32xf32>
    %291 = math.exp %290 : vector<2x32xf32>
    %cst_110 = arith.constant 1.000000e+00 : f32
    %292 = vector.broadcast %cst_110 : f32 to vector<2x32xf32>
    %293 = arith.addf %292, %291 : vector<2x32xf32>
    %294 = arith.divf %292, %293 : vector<2x32xf32>
    %295 = arith.index_cast %c6_i32 : i32 to index
    %c0_111 = arith.constant 0 : index
    %c0_112 = arith.constant 0 : index
    %296 = vector.load %arg4[%295, %c0_111, %c0_112] : memref<8x2x32xf32, #tpu.memory_space<vmem>>, vector<1x2x32xf32>
    %297 = vector.shape_cast %296 : vector<1x2x32xf32> to vector<2x32xf32>
    %298 = arith.mulf %285, %276 : vector<2x32xf32>
    %299 = arith.addf %297, %298 : vector<2x32xf32>
    %300 = math.tanh %299 : vector<2x32xf32>
    %cst_113 = arith.constant 1.000000e+00 : f32
    %301 = vector.broadcast %cst_113 : f32 to vector<2x32xf32>
    %302 = arith.subf %301, %294 : vector<2x32xf32>
    %303 = arith.mulf %302, %300 : vector<2x32xf32>
    %304 = arith.mulf %294, %263 : vector<2x32xf32>
    %305 = arith.addf %303, %304 : vector<2x32xf32>
    %306 = arith.index_cast %c6_i32 : i32 to index
    %c0_114 = arith.constant 0 : index
    %c0_115 = arith.constant 0 : index
    %307 = vector.load %arg8[%306, %c0_114, %c0_115] : memref<8x2x32xf32, #tpu.memory_space<vmem>>, vector<1x2x32xf32>
    %308 = vector.shape_cast %307 : vector<1x2x32xf32> to vector<2x32xf32>
    %309 = vector.shape_cast %305 : vector<2x32xf32> to vector<1x2x32xf32>
    tpu.vector_store %arg8[%306, %c0_114, %c0_115], %309 {strides = array<i32>} : memref<8x2x32xf32, #tpu.memory_space<vmem>>, vector<1x2x32xf32>,
    %c7_i32 = arith.constant 7 : i32
    %cst_116 = arith.constant dense<0.000000e+00> : vector<2x32xf32>
    %310 = tpu.matmul %305, %4, %cst_116 {dimension_numbers = #tpu.dot_dimension_numbers<[1], [0], [0], [1], [0, 0, 1, 1], [], []>} : vector<2x32xf32>, vector<32x32xf32>, vector<2x32xf32> -> vector<2x32xf32>
    %311 = vector.broadcast %10 : vector<1x32xf32> to vector<2x32xf32>
    %312 = arith.addf %310, %311 : vector<2x32xf32>
    %cst_117 = arith.constant dense<0.000000e+00> : vector<2x32xf32>
    %313 = tpu.matmul %305, %6, %cst_117 {dimension_numbers = #tpu.dot_dimension_numbers<[1], [0], [0], [1], [0, 0, 1, 1], [], []>} : vector<2x32xf32>, vector<32x32xf32>, vector<2x32xf32> -> vector<2x32xf32>
    %314 = vector.broadcast %12 : vector<1x32xf32> to vector<2x32xf32>
    %315 = arith.addf %313, %314 : vector<2x32xf32>
    %cst_118 = arith.constant dense<0.000000e+00> : vector<2x32xf32>
    %316 = tpu.matmul %305, %8, %cst_118 {dimension_numbers = #tpu.dot_dimension_numbers<[1], [0], [0], [1], [0, 0, 1, 1], [], []>} : vector<2x32xf32>, vector<32x32xf32>, vector<2x32xf32> -> vector<2x32xf32>
    %317 = vector.broadcast %14 : vector<1x32xf32> to vector<2x32xf32>
    %318 = arith.addf %316, %317 : vector<2x32xf32>
    %319 = arith.index_cast %c7_i32 : i32 to index
    %c0_119 = arith.constant 0 : index
    %c0_120 = arith.constant 0 : index
    %320 = vector.load %arg2[%319, %c0_119, %c0_120] : memref<8x2x32xf32, #tpu.memory_space<vmem>>, vector<1x2x32xf32>
    %321 = vector.shape_cast %320 : vector<1x2x32xf32> to vector<2x32xf32>
    %322 = arith.addf %321, %312 : vector<2x32xf32>
    %323 = arith.negf %322 : vector<2x32xf32>
    %324 = math.exp %323 : vector<2x32xf32>
    %cst_121 = arith.constant 1.000000e+00 : f32
    %325 = vector.broadcast %cst_121 : f32 to vector<2x32xf32>
    %326 = arith.addf %325, %324 : vector<2x32xf32>
    %327 = arith.divf %325, %326 : vector<2x32xf32>
    %328 = arith.index_cast %c7_i32 : i32 to index
    %c0_122 = arith.constant 0 : index
    %c0_123 = arith.constant 0 : index
    %329 = vector.load %arg3[%328, %c0_122, %c0_123] : memref<8x2x32xf32, #tpu.memory_space<vmem>>, vector<1x2x32xf32>
    %330 = vector.shape_cast %329 : vector<1x2x32xf32> to vector<2x32xf32>
    %331 = arith.addf %330, %315 : vector<2x32xf32>
    %332 = arith.negf %331 : vector<2x32xf32>
    %333 = math.exp %332 : vector<2x32xf32>
    %cst_124 = arith.constant 1.000000e+00 : f32
    %334 = vector.broadcast %cst_124 : f32 to vector<2x32xf32>
    %335 = arith.addf %334, %333 : vector<2x32xf32>
    %336 = arith.divf %334, %335 : vector<2x32xf32>
    %337 = arith.index_cast %c7_i32 : i32 to index
    %c0_125 = arith.constant 0 : index
    %c0_126 = arith.constant 0 : index
    %338 = vector.load %arg4[%337, %c0_125, %c0_126] : memref<8x2x32xf32, #tpu.memory_space<vmem>>, vector<1x2x32xf32>
    %339 = vector.shape_cast %338 : vector<1x2x32xf32> to vector<2x32xf32>
    %340 = arith.mulf %327, %318 : vector<2x32xf32>
    %341 = arith.addf %339, %340 : vector<2x32xf32>
    %342 = math.tanh %341 : vector<2x32xf32>
    %cst_127 = arith.constant 1.000000e+00 : f32
    %343 = vector.broadcast %cst_127 : f32 to vector<2x32xf32>
    %344 = arith.subf %343, %336 : vector<2x32xf32>
    %345 = arith.mulf %344, %342 : vector<2x32xf32>
    %346 = arith.mulf %336, %305 : vector<2x32xf32>
    %347 = arith.addf %345, %346 : vector<2x32xf32>
    %348 = arith.index_cast %c7_i32 : i32 to index
    %c0_128 = arith.constant 0 : index
    %c0_129 = arith.constant 0 : index
    %349 = vector.load %arg8[%348, %c0_128, %c0_129] : memref<8x2x32xf32, #tpu.memory_space<vmem>>, vector<1x2x32xf32>
    %350 = vector.shape_cast %349 : vector<1x2x32xf32> to vector<2x32xf32>
    %351 = vector.shape_cast %347 : vector<2x32xf32> to vector<1x2x32xf32>
    tpu.vector_store %arg8[%348, %c0_128, %c0_129], %351 {strides = array<i32>} : memref<8x2x32xf32, #tpu.memory_space<vmem>>, vector<1x2x32xf32>,
    %c8_i32 = arith.constant 8 : i32
    %c0_130 = arith.constant 0 : index
    %c0_131 = arith.constant 0 : index
    %352 = vector.load %arg9[%c0_130, %c0_131] : memref<2x32xf32, #tpu.memory_space<vmem>>, vector<2x32xf32>
    tpu.vector_store %arg9[%c0_130, %c0_131], %347 {strides = array<i32>} : memref<2x32xf32, #tpu.memory_space<vmem>>, vector<2x32xf32>,
    return
  }
  func.func @transform_0(%arg0: i32, %arg1: i32) -> (i32, i32, i32) {
    %c0_i32 = arith.constant 0 : i32
    %c0_i32_0 = arith.constant 0 : i32
    return %arg1, %arg0, %c0_i32 : i32, i32, i32
  }
  func.func @transform_1(%arg0: i32, %arg1: i32) -> (i32, i32, i32) {
    %c0_i32 = arith.constant 0 : i32
    %c0_i32_0 = arith.constant 0 : i32
    return %arg1, %arg0, %c0_i32 : i32, i32, i32
  }
  func.func @transform_2(%arg0: i32, %arg1: i32) -> (i32, i32, i32) {
    %c0_i32 = arith.constant 0 : i32
    %c0_i32_0 = arith.constant 0 : i32
    return %arg1, %arg0, %c0_i32 : i32, i32, i32
  }
  func.func @transform_3(%arg0: i32, %arg1: i32) -> (i32, i32) {
    %c0_i32 = arith.constant 0 : i32
    %c0_i32_0 = arith.constant 0 : i32
    return %arg0, %c0_i32 : i32, i32
  }
  func.func @transform_4(%arg0: i32, %arg1: i32) -> (i32, i32, i32) {
    %c0_i32 = arith.constant 0 : i32
    %c0_i32_0 = arith.constant 0 : i32
    %c0_i32_1 = arith.constant 0 : i32
    %c0_i32_2 = arith.constant 0 : i32
    return %c0_i32, %c0_i32_0, %c0_i32_1 : i32, i32, i32
  }
  func.func @transform_5(%arg0: i32, %arg1: i32) -> (i32, i32, i32) {
    %c0_i32 = arith.constant 0 : i32
    %c0_i32_0 = arith.constant 0 : i32
    %c0_i32_1 = arith.constant 0 : i32
    %c0_i32_2 = arith.constant 0 : i32
    return %c0_i32, %c0_i32_0, %c0_i32_1 : i32, i32, i32
  }
  func.func @transform_6(%arg0: i32, %arg1: i32) -> (i32, i32, i32) {
    %c0_i32 = arith.constant 0 : i32
    %c0_i32_0 = arith.constant 0 : i32
    return %arg1, %arg0, %c0_i32 : i32, i32, i32
  }
  func.func @transform_7(%arg0: i32, %arg1: i32) -> (i32, i32) {
    %c0_i32 = arith.constant 0 : i32
    %c0_i32_0 = arith.constant 0 : i32
    return %arg0, %c0_i32 : i32, i32
  }
}

</mosaic_0001>

<bundles_post_ra>
// kernel: tpu_custom_call.1
= control target key start
LH: loop header
LB: loop body
LE: loop exit
PB: predicated region body
PF: predicated region fallthrough
CT: control target
= control target key end

     0   :  { %13 = vsyncpa [#allocation3], 0  ;;  %s3286_s0 = inlined_call_operand.hbm [shape: f32[8,2,32], index: 0, kind: input, shape index: {}]   ;;  %s3287_s1 = inlined_call_operand.hbm [shape: f32[8,2,32], index: 1, kind: input, shape index: {}]   ;;  %s3288_s2 = inlined_call_operand.hbm [shape: f32[8,2,32], index: 2, kind: input, shape index: {}]   ;;  %s3289_s3 = inlined_call_operand.vmem [shape: f32[2,32], index: 3, kind: input, shape index: {}]   ;;  %s3290_s4 = inlined_call_operand.hbm [shape: f32[3,32,32], index: 4, kind: input, shape index: {}]   ;;  %s3291_s5 = inlined_call_operand.vmem [shape: f32[3,1,32], index: 5, kind: input, shape index: {}]   ;;  %s3292_s6 = inlined_call_operand.hbm [shape: f32[8,2,32], index: 6, kind: output, shape index: {0}]   ;;  %s3293_s7 = inlined_call_operand.hbm [shape: f32[2,32], index: 7, kind: output, shape index: {1}]  }
   0x1   :  { %14 = vsyncpa [#allocation6], 0 }
   0x2   :  { %15 = vsyncpa [#allocation9], 0 }
   0x3   :  { %16 = vsyncpa [#allocation4], 0 }
   0x4   :  { %17 = vsyncpa [#allocation12], 0  ;;  %s2903_s24 = smov [#allocation5]   ;;  %s2904_s26 = smov [#allocation2]  }
   0x5   :  { %s35_s25 = sshll.u32 %s2903_s24, 4  ;;  %s23_s27 = sshll.u32 %s2904_s26, 4  ;;  %s36_s25 = int_to_ptr.vmem [resolvable:$true] %s35_s25  ;;  %s2956_s27 = int_to_ptr.vmem [resolvable:$true] %s23_s27 }
   0x6   :  { %s2761_s30 = scalar_lea.hbm %s3287_s1, 256 }
   0x7   :  { %p2762_p0 = scmp.ne.s32.totalorder %s3287_s1, %s2761_s30  ;;  %p2765_p1 = scmp.lt.u32.totalorder %s2761_s30, %s3287_s1 }
   0x9   :  { %p2767_p2 = pnand %p2765_p1, %p2762_p0 }
   0xb   :  { %2770 = shalt.err (!%p2767_p2)
}
   0xc   :  { %s2771_s12 = scalar_lea.vmem %s36_s25, 256  ;;  %p2776_p4 = scmp.lt.s32.totalorder %s36_s25, %s36_s25 }
   0xd   :  { %p2772_p3 = scmp.ne.s32.totalorder %s36_s25, %s2771_s12  ;;  %p2777_p5 = scmp.lt.s32.totalorder %s2771_s12, %s2771_s12 }
   0xf   :  { %p2778_p6 = por %p2777_p5, %p2776_p4 }
  0x11   :  { %p2779_p7 = pnand %p2778_p6, %p2772_p3 }
  0x13   :  { %2782 = shalt.err (!%p2779_p7)
}
  0x14   :  { %s2905_s13 = smov 32   ;;  %s2906_s14 = smov 2  }
  0x15   :  { %41 = dma.hbm_to_vmem [thread:$0]  %s3287_s1, 256, %s36_s25, [#allocation6], %s2905_s13, %s2905_s13, %s2906_s14  }
  0x16   :  { %s2783_s19 = scalar_lea.hbm %s3286_s0, 256 }
  0x17   :  { %p2784_p8 = scmp.ne.s32.totalorder %s3286_s0, %s2783_s19  ;;  %p2787_p9 = scmp.lt.u32.totalorder %s2783_s19, %s3286_s0 }
  0x19   :  { %p2789_p10 = pnand %p2787_p9, %p2784_p8 }
  0x1b   :  { %2792 = shalt.err (!%p2789_p10)
}
  0x1c   :  { %s2793_s24 = scalar_lea.vmem %s2956_s27, 256  ;;  %p2798_p12 = scmp.lt.s32.totalorder %s2956_s27, %s2956_s27 }
  0x1d   :  { %p2794_p11 = scmp.ne.s32.totalorder %s2956_s27, %s2793_s24  ;;  %p2799_p13 = scmp.lt.s32.totalorder %s2793_s24, %s2793_s24 }
  0x1f   :  { %p2800_p0 = por %p2799_p13, %p2798_p12 }
  0x21   :  { %p2801_p1 = pnand %p2800_p0, %p2794_p11 }
  0x23   :  { %2804 = shalt.err (!%p2801_p1)
}
  0x24   :  { %29 = dma.hbm_to_vmem [thread:$0]  %s3286_s0, 256, %s2956_s27, [#allocation3], %s2905_s13, %s2905_s13, %s2906_s14  }
  0x25   :  { %s2907_s26 = smov [#allocation7]   ;;  %s2908_s29 = smov [#allocation8]  }
  0x26   :  { %s47_s28 = sshll.u32 %s2907_s26, 4  ;;  %s61_s30 = sshll.u32 %s2908_s29, 4  ;;  %s48_s28 = int_to_ptr.vmem [resolvable:$true] %s47_s28  ;;  %s2993_s30 = int_to_ptr.vmem [resolvable:$true] %s61_s30 }
  0x27   :  { %s2805_s10 = scalar_lea.hbm %s3288_s2, 256 }
  0x28   :  { %p2806_p2 = scmp.ne.s32.totalorder %s3288_s2, %s2805_s10  ;;  %p2809_p3 = scmp.lt.u32.totalorder %s2805_s10, %s3288_s2 }
  0x2a   :  { %p2811_p4 = pnand %p2809_p3, %p2806_p2 }
  0x2c   :  { %2814 = shalt.err (!%p2811_p4)
}
  0x2d   :  { %s2815_s0 = scalar_lea.vmem %s48_s28, 256  ;;  %p2820_p6 = scmp.lt.s32.totalorder %s48_s28, %s48_s28 }
  0x2e   :  { %p2816_p5 = scmp.ne.s32.totalorder %s48_s28, %s2815_s0  ;;  %p2821_p7 = scmp.lt.s32.totalorder %s2815_s0, %s2815_s0 }
  0x30   :  { %p2822_p8 = por %p2821_p7, %p2820_p6 }
  0x32   :  { %p2823_p9 = pnand %p2822_p8, %p2816_p5 }
  0x34   :  { %2826 = shalt.err (!%p2823_p9)
}
  0x35   :  { %53 = dma.hbm_to_vmem [thread:$0]  %s3288_s2, 256, %s48_s28, [#allocation6], %s2905_s13, %s2905_s13, %s2906_s14  }
  0x36   :  { %s2827_s20 = scalar_lea.hbm %s3290_s4, 1536 }
  0x37   :  { %p2828_p10 = scmp.ne.s32.totalorder %s3290_s4, %s2827_s20  ;;  %p2831_p11 = scmp.lt.u32.totalorder %s2827_s20, %s3290_s4 }
  0x39   :  { %p2833_p12 = pnand %p2831_p11, %p2828_p10 }
  0x3b   :  { %2836 = shalt.err (!%p2833_p12)
}
  0x3c   :  { %s2837_s1 = scalar_lea.vmem %s2993_s30, 1536  ;;  %p2842_p0 = scmp.lt.s32.totalorder %s2993_s30, %s2993_s30 }
  0x3d   :  { %p2838_p13 = scmp.ne.s32.totalorder %s2993_s30, %s2837_s1  ;;  %p2843_p1 = scmp.lt.s32.totalorder %s2837_s1, %s2837_s1 }
  0x3f   :  { %p2844_p2 = por %p2843_p1, %p2842_p0 }
  0x41   :  { %p2845_p3 = pnand %p2844_p2, %p2838_p13 }
  0x43   :  { %2848 = shalt.err (!%p2845_p3)
}
  0x44   :  { %s2909_s2 = smov 128   ;;  %s2910_s25 = smov 8  }
  0x45   :  { %67 = dma.hbm_to_vmem [thread:$0]  %s3290_s4, 1536, %s2993_s30, [#allocation9], %s2909_s2, %s2909_s2, %s2910_s25  }
  0x46   :  { %2893 = dma.done.wait [#allocation3], 256  }
  0x47   :  { %2894 = vsyncadd [#allocation3], 4294967040 }
  0x48   :  { %2895 = dma.done.wait [#allocation6], 512  }
  0x49   :  { %2896 = vsyncadd [#allocation6], 4294966784 }
  0x4a   :  { %2897 = dma.done.wait [#allocation9], 1536  }
  0x4b   :  { %2898 = vsyncadd [#allocation9], 4294965760  ;;  %v2911_v0 = vmov 0.0|0.0   ;;  %vm2912_vm0 = vmmov 0   ;;  %v2913_v1 = vmov 0.0   ;;  %vm87_vm1 = vcmask 254976  }
  0x4c   :  { %2524 = vmatprep.subr.bf16.mxu0 %v2911_v0  ;;  %2268 = vmatprep.mubr.msk.f32.mxu0 %vm2912_vm0, %v2913_v1  ;;  %v89_v2 = vld [vmem:[#allocation8] sm:$0xff]  ;;  %v90_v3 = vld [vmem:[#allocation8 + $0x8] sm:$0xff]  ;;  %v91_v4 = vld [vmem:[#allocation8 + $0x10] sm:$0xff]  ;;  %vm115_vm2 = vcmask 261120   ;;  %s2915_s15 = smov [#allocation11]  }
  0x4d   :  { %2530 = vmatprep.subr.bf16.mxu1 %v2911_v0  ;;  %2279 = vmatprep.mubr.msk.f32.mxu1 %vm2912_vm0, %v2913_v1  ;;  %v3033_v5 = vpack.c.bf16 %v90_v3, %v89_v2  ;;  %v92_v6 = vld [vmem:[#allocation8 + $0x18] sm:$0xff]  ;;  %v86_v7 = vld [vmem:[%s3289_s3] sm:$0x3]  ;;  %v94_v8 = vld [vmem:[#allocation8 + $0x20] sm:$0xff]  ;;  %s2080_s16 = sshll.u32 %s2915_s15, 4  ;;  %s2081_s16 = int_to_ptr.vmem [resolvable:$true] %s2080_s16 }
  0x4e   :  { %88 = vst.msk [vmem:[#allocation11] sm:$0x3] %vm87_vm1, %v86_v7  ;;  %v95_v9 = vld [vmem:[#allocation8 + $0x28] sm:$0xff]  ;;  %v96_v10 = vld [vmem:[#allocation8 + $0x30] sm:$0xff]  ;;  %v97_v11 = vld [vmem:[#allocation8 + $0x38] sm:$0xff]  ;;  %v3040_v12 = vpack.c.bf16 %v92_v6, %v91_v4 }
  0x4f   :  { %2526 = vmatpush3.bf16.msra.mxu0 %v3033_v5  ;;  %v3042_v13 = vpack.c.bf16 %v95_v9, %v94_v8  ;;  %v99_v14 = vld [vmem:[#allocation8 + $0x40] sm:$0xff]  ;;  %v100_v15 = vld [vmem:[#allocation8 + $0x48] sm:$0xff]  ;;  %v3046_v16 = vpack.c.bf16 %v97_v11, %v96_v10  ;;  %v101_v18 = vld [vmem:[#allocation8 + $0x50] sm:$0xff] }
  0x50   :  { %2527 = vmatprep.subr.bf16.mxu0 %v2911_v0  ;;  %v3050_v17 = vpack.c.bf16 %v100_v15, %v99_v14  ;;  %v102_v19 = vld [vmem:[#allocation8 + $0x58] sm:$0xff]  ;;  %v3081_v22 = vld [vmem:[%s3291_s5] ss:$0 sm:$0xff]  ;;  %v3086_v25 = vld [vmem:[%s3291_s5 + $0x1] ss:$0 sm:$0xff] }
  0x51   :  { %2532 = vmatpush3.bf16.msra.mxu1 %v3042_v13  ;;  %v3057_v21 = vpack.c.bf16 %v102_v19, %v101_v18  ;;  %v341_v24 = vld [vmem:[#allocation2] sm:$0x3]  ;;  %v349_v29 = vld [vmem:[#allocation5] sm:$0x3]  ;;  %v3093_v41 = vld [vmem:[%s3291_s5 + $0x2] ss:$0 sm:$0xff] }
  0x52   :  { %2533 = vmatprep.subr.bf16.mxu1 %v2911_v0  ;;  %v357_v45 = vld [vmem:[#allocation7] sm:$0x3]  ;;  %v581_v55 = vld [vmem:[#allocation2 + $0x2] sm:$0x3]  ;;  %v590_v62 = vld [vmem:[#allocation5 + $0x2] sm:$0x3] }
  0x53   :  { %2529 = vmatpush3.bf16.msra.mxu0 %v3040_v12  ;;  %v599_v15 = vld [vmem:[#allocation7 + $0x2] sm:$0x3]  ;;  %s2914_s5 = smov [#allocation10]  }
  0x54   :  { %2536 = vmatprep.subr.bf16.mxu0 %v2911_v0  ;;  %s2067_s12 = sshll.u32 %s2914_s5, 4  ;;  %s2068_s12 = int_to_ptr.vmem [resolvable:$true] %s2067_s12 }
  0x55   :  { %v108_v20 = vld [vmem:[#allocation11] sm:$0x3]  ;;  %2535 = vmatpush3.bf16.msra.mxu1 %v3046_v16  ;;  %s2849_s0 = scalar_lea.vmem %s2068_s12, 256  ;;  %p2854_p5 = scmp.lt.s32.totalorder %s2068_s12, %s2068_s12 }
  0x56   :  { %2269 = vmatmul.mubr.msk.f32.vlgmr.msra.gmra.mrb[0].mxu0 %vm115_vm2, %v108_v20  ;;  %2542 = vmatprep.subr.bf16.mxu1 %v2911_v0  ;;  %p2850_p4 = scmp.ne.s32.totalorder %s2068_s12, %s2849_s0  ;;  %p2855_p6 = scmp.lt.s32.totalorder %s2849_s0, %s2849_s0 }
  0x57   :  { %2538 = vmatpush3.bf16.msra.mxu0 %v3050_v17  ;;  %2290 = vmatprep.mubr.msk.f32.mxu0 %vm2912_vm0, %v2913_v1 }
  0x58   :  { %2280 = vmatmul.mubr.msk.f32.vlgmr.msra.gmra.mrb[0].mxu1 %vm115_vm2, %v108_v20  ;;  %2539 = vmatprep.subr.bf16.mxu0 %v2911_v0  ;;  %p2856_p7 = por %p2855_p6, %p2854_p5 }
  0x59   :  { %2544 = vmatpush3.bf16.msra.mxu1 %v3033_v5  ;;  %2301 = vmatprep.mubr.msk.f32.mxu1 %vm2912_vm0, %v2913_v1 }
  0x5a   :  { %2545 = vmatprep.subr.bf16.mxu1 %v2911_v0  ;;  %p2857_p8 = pnand %p2856_p7, %p2850_p4 }
  0x5b   :  { %2541 = vmatpush3.bf16.msra.mxu0 %v3057_v21 }
  0x5c   :  { %2548 = vmatprep.subr.bf16.mxu0 %v2911_v0 }
  0x5d   :  { %2547 = vmatpush3.bf16.msra.mxu1 %v3040_v12 }
  0x5e   :  { %2291 = vmatmul.mubr.msk.f32.vlgmr.msra.gmra.mrb[2].mxu0 %vm115_vm2, %v108_v20  ;;  %2554 = vmatprep.subr.bf16.mxu1 %v2911_v0 }
  0x5f   :  { %2550 = vmatpush3.bf16.msra.mxu0 %v3042_v13  ;;  %2312 = vmatprep.mubr.msk.f32.mxu0 %vm2912_vm0, %v2913_v1 }
  0x60   :  { %2551 = vmatprep.subr.bf16.mxu0 %v2911_v0 }
  0x63   :  { %2553 = vmatpush3.bf16.msra.mxu0 %v3046_v16 }
  0x64   :  { %2560 = vmatprep.subr.bf16.mxu0 %v2911_v0 }
 0x129   :  { %v185_v23 = vpop.f32.mrb[0].mxu0 }
 0x12a   :  { %v186_v26 = vadd.f32 %v3081_v22, %v185_v23  ;;  %v2270_v27 = vpop.f32.mrb[1].mxu0 }
 0x12b   :  { %v261_v28 = vpop.f32.mrb[0].mxu1 }
 0x12c   :  { %v342_v30 = vadd.f32 %v341_v24, %v186_v26  ;;  %v262_v31 = vadd.f32 %v3086_v25, %v261_v28  ;;  %v2281_v32 = vpop.f32.mrb[1].mxu1 }
 0x12e   :  { %v2103_v33 = vmul.f32 -1.442695, %v342_v30  ;;  %v350_v34 = vadd.f32 %v349_v29, %v262_v31  ;;  %v823_v30 = vld [vmem:[#allocation2 + $0x4] sm:$0x3] }
 0x130   :  { %2681 = vpow2.f32 %v2103_v33  ;;  %v2104_v35 = vmul.f32 -1.442695, %v350_v34 }
 0x131   :  { %v337_v36 = vpop.f32.mrb[2].mxu0 }
 0x132   :  { %v2292_v37 = vpop.f32.mrb[3].mxu0  ;;  %2683 = vpow2.f32 %v2104_v35  ;;  %v338_v43 = vadd.f32 %v3093_v41, %v337_v36 }
 0x133   :  { %v832_v37 = vld [vmem:[#allocation5 + $0x4] sm:$0x3] }
 0x13a   :  { %v2682_v38 = vpop.eup %2681 }
 0x13b   :  { %v346_v39 = vadd.f32 1.0, %v2682_v38 }
 0x13c   :  { %v2684_v40 = vpop.eup %2683 }
 0x13d   :  { %2685 = vrcp.f32 %v346_v39  ;;  %v354_v42 = vadd.f32 1.0, %v2684_v40 }
 0x13f   :  { %2687 = vrcp.f32 %v354_v42 }
 0x147   :  { %v2686_v44 = vpop.eup %2685 }
 0x148   :  { %v358_v46 = vmul.f32 %v2686_v44, %v338_v43 }
 0x149   :  { %v2688_v48 = vpop.eup %2687 }
 0x14a   :  { %v359_v47 = vadd.f32 %v358_v46, %v357_v45  ;;  %v361_v49 = vsub.f32 1.0, %v2688_v48  ;;  %v363_v52 = vmul.f32 %v2688_v48, %v108_v20 }
 0x14c   :  { %2689 = vtanh.f32 %v359_v47 }
 0x156   :  { %v2690_v50 = vpop.eup %2689 }
 0x157   :  { %v362_v51 = vmul.f32 %v2690_v50, %v361_v49  ;;  %v841_v50 = vld [vmem:[#allocation7 + $0x4] sm:$0x3] }
 0x159   :  { %v364_v53 = vadd.f32 %v363_v52, %v362_v51 }
 0x15b   :  { %2302 = vmatmul.mubr.msk.f32.vlgmr.msra.gmra.mrb[2].mxu1 %vm115_vm2, %v364_v53  ;;  %366 = vst.msk [vmem:[#allocation10] sm:$0x3] %vm87_vm1, %v364_v53  ;;  %2313 = vmatmul.mubr.msk.f32.vlgmr.msra.gmra.mrb[4].mxu0 %vm115_vm2, %v364_v53 }
 0x15c   :  { %2556 = vmatpush3.bf16.msra.mxu1 %v3050_v17  ;;  %2323 = vmatprep.mubr.msk.f32.mxu1 %vm2912_vm0, %v2913_v1 }
 0x15d   :  { %2557 = vmatprep.subr.bf16.mxu1 %v2911_v0  ;;  %2562 = vmatpush3.bf16.msra.mxu0 %v3033_v5 }
 0x15e   :  { %2563 = vmatprep.subr.bf16.mxu0 %v2911_v0  ;;  %2334 = vmatprep.mubr.msk.f32.mxu0 %vm2912_vm0, %v2913_v1 }
 0x160   :  { %2559 = vmatpush3.bf16.msra.mxu1 %v3057_v21 }
 0x161   :  { %2566 = vmatprep.subr.bf16.mxu1 %v2911_v0  ;;  %2565 = vmatpush3.bf16.msra.mxu0 %v3040_v12 }
 0x162   :  { %2572 = vmatprep.subr.bf16.mxu0 %v2911_v0 }
 0x163   :  { %2324 = vmatmul.mubr.msk.f32.vlgmr.msra.gmra.mrb[4].mxu1 %vm115_vm2, %v364_v53 }
 0x164   :  { %2568 = vmatpush3.bf16.msra.mxu1 %v3042_v13  ;;  %2345 = vmatprep.mubr.msk.f32.mxu1 %vm2912_vm0, %v2913_v1 }
 0x165   :  { %2569 = vmatprep.subr.bf16.mxu1 %v2911_v0 }
 0x168   :  { %2571 = vmatpush3.bf16.msra.mxu1 %v3046_v16 }
 0x169   :  { %2578 = vmatprep.subr.bf16.mxu1 %v2911_v0 }
 0x22e   :  { %v436_v54 = vpop.f32.mrb[2].mxu1  ;;  %v506_v56 = vpop.f32.mrb[4].mxu0 }
 0x22f   :  { %v437_v57 = vadd.f32 %v3081_v22, %v436_v54  ;;  %v2303_v58 = vpop.f32.mrb[3].mxu1  ;;  %v2314_v59 = vpop.f32.mrb[5].mxu0  ;;  %v507_v60 = vadd.f32 %v3086_v25, %v506_v56 }
 0x231   :  { %v582_v61 = vadd.f32 %v581_v55, %v437_v57  ;;  %v591_v2 = vadd.f32 %v590_v62, %v507_v60  ;;  %v1065_v60 = vld [vmem:[#allocation2 + $0x6] sm:$0x3] }
 0x233   :  { %v2108_v63 = vmul.f32 -1.442695, %v582_v61  ;;  %v2109_v6 = vmul.f32 -1.442695, %v591_v2 }
 0x235   :  { %2691 = vpow2.f32 %v2108_v63 }
 0x236   :  { %v576_v3 = vpop.f32.mrb[4].mxu1  ;;  %2693 = vpow2.f32 %v2109_v6  ;;  %v1074_v6 = vld [vmem:[#allocation5 + $0x6] sm:$0x3] }
 0x237   :  { %v2325_v4 = vpop.f32.mrb[5].mxu1  ;;  %v577_v11 = vadd.f32 %v3093_v41, %v576_v3 }
 0x23f   :  { %v2692_v7 = vpop.eup %2691 }
 0x240   :  { %v586_v8 = vadd.f32 1.0, %v2692_v7  ;;  %v2694_v9 = vpop.eup %2693 }
 0x241   :  { %v595_v10 = vadd.f32 1.0, %v2694_v9 }
 0x242   :  { %2695 = vrcp.f32 %v586_v8 }
 0x243   :  { %2697 = vrcp.f32 %v595_v10 }
 0x24c   :  { %v2696_v14 = vpop.eup %2695 }
 0x24d   :  { %v600_v18 = vmul.f32 %v2696_v14, %v577_v11  ;;  %v2698_v20 = vpop.eup %2697 }
 0x24e   :  { %v603_v23 = vsub.f32 1.0, %v2698_v20  ;;  %v605_v27 = vmul.f32 %v2698_v20, %v364_v53 }
 0x24f   :  { %v601_v19 = vadd.f32 %v600_v18, %v599_v15 }
 0x251   :  { %2699 = vtanh.f32 %v601_v19 }
 0x25b   :  { %v2700_v24 = vpop.eup %2699 }
 0x25c   :  { %v604_v26 = vmul.f32 %v2700_v24, %v603_v23  ;;  %v1083_v24 = vld [vmem:[#allocation7 + $0x6] sm:$0x3] }
 0x25e   :  { %v606_v28 = vadd.f32 %v605_v27, %v604_v26 }
 0x260   :  { %2335 = vmatmul.mubr.msk.f32.vlgmr.msra.gmra.mrb[6].mxu0 %vm115_vm2, %v606_v28  ;;  %608 = vst.msk [vmem:[#allocation10 + $0x2] sm:$0x3] %vm87_vm1, %v606_v28  ;;  %2346 = vmatmul.mubr.msk.f32.vlgmr.msra.gmra.mrb[6].mxu1 %vm115_vm2, %v606_v28 }
 0x261   :  { %2574 = vmatpush3.bf16.msra.mxu0 %v3050_v17  ;;  %2356 = vmatprep.mubr.msk.f32.mxu0 %vm2912_vm0, %v2913_v1 }
 0x262   :  { %2575 = vmatprep.subr.bf16.mxu0 %v2911_v0  ;;  %2580 = vmatpush3.bf16.msra.mxu1 %v3033_v5 }
 0x263   :  { %2581 = vmatprep.subr.bf16.mxu1 %v2911_v0  ;;  %2367 = vmatprep.mubr.msk.f32.mxu1 %vm2912_vm0, %v2913_v1 }
 0x265   :  { %2577 = vmatpush3.bf16.msra.mxu0 %v3057_v21 }
 0x266   :  { %2584 = vmatprep.subr.bf16.mxu0 %v2911_v0  ;;  %2583 = vmatpush3.bf16.msra.mxu1 %v3040_v12 }
 0x267   :  { %2590 = vmatprep.subr.bf16.mxu1 %v2911_v0 }
 0x268   :  { %2357 = vmatmul.mubr.msk.f32.vlgmr.msra.gmra.mrb[8].mxu0 %vm115_vm2, %v606_v28 }
 0x269   :  { %2586 = vmatpush3.bf16.msra.mxu0 %v3042_v13  ;;  %2378 = vmatprep.mubr.msk.f32.mxu0 %vm2912_vm0, %v2913_v1 }
 0x26a   :  { %2587 = vmatprep.subr.bf16.mxu0 %v2911_v0 }
 0x26d   :  { %2589 = vmatpush3.bf16.msra.mxu0 %v3046_v16 }
 0x26e   :  { %2596 = vmatprep.subr.bf16.mxu0 %v2911_v0 }
 0x333   :  { %v678_v29 = vpop.f32.mrb[6].mxu0  ;;  %v748_v31 = vpop.f32.mrb[6].mxu1 }
 0x334   :  { %v679_v32 = vadd.f32 %v3081_v22, %v678_v29  ;;  %v2336_v33 = vpop.f32.mrb[7].mxu0  ;;  %v2347_v34 = vpop.f32.mrb[7].mxu1  ;;  %v749_v35 = vadd.f32 %v3086_v25, %v748_v31 }
 0x336   :  { %v824_v36 = vadd.f32 %v823_v30, %v679_v32  ;;  %v833_v39 = vadd.f32 %v832_v37, %v749_v35  ;;  %v1307_v35 = vld [vmem:[#allocation2 + $0x8] sm:$0x3] }
 0x338   :  { %v2113_v38 = vmul.f32 -1.442695, %v824_v36  ;;  %v2114_v43 = vmul.f32 -1.442695, %v833_v39 }
 0x33a   :  { %2701 = vpow2.f32 %v2113_v38 }
 0x33b   :  { %v818_v40 = vpop.f32.mrb[8].mxu0  ;;  %2703 = vpow2.f32 %v2114_v43  ;;  %v1316_v43 = vld [vmem:[#allocation5 + $0x8] sm:$0x3] }
 0x33c   :  { %v2358_v42 = vpop.f32.mrb[9].mxu0  ;;  %v819_v48 = vadd.f32 %v3093_v41, %v818_v40 }
 0x344   :  { %v2702_v44 = vpop.eup %2701 }
 0x345   :  { %v828_v45 = vadd.f32 1.0, %v2702_v44  ;;  %v2704_v46 = vpop.eup %2703 }
 0x346   :  { %v837_v47 = vadd.f32 1.0, %v2704_v46 }
 0x347   :  { %2705 = vrcp.f32 %v828_v45 }
 0x348   :  { %2707 = vrcp.f32 %v837_v47 }
 0x351   :  { %v2706_v49 = vpop.eup %2705 }
 0x352   :  { %v842_v51 = vmul.f32 %v2706_v49, %v819_v48  ;;  %v2708_v53 = vpop.eup %2707 }
 0x353   :  { %v845_v54 = vsub.f32 1.0, %v2708_v53  ;;  %v847_v57 = vmul.f32 %v2708_v53, %v606_v28 }
 0x354   :  { %v843_v52 = vadd.f32 %v842_v51, %v841_v50 }
 0x356   :  { %2709 = vtanh.f32 %v843_v52 }
 0x360   :  { %v2710_v55 = vpop.eup %2709 }
 0x361   :  { %v846_v56 = vmul.f32 %v2710_v55, %v845_v54  ;;  %v1325_v55 = vld [vmem:[#allocation7 + $0x8] sm:$0x3] }
 0x363   :  { %v848_v58 = vadd.f32 %v847_v57, %v846_v56 }
 0x365   :  { %2368 = vmatmul.mubr.msk.f32.vlgmr.msra.gmra.mrb[8].mxu1 %vm115_vm2, %v848_v58  ;;  %850 = vst.msk [vmem:[#allocation10 + $0x4] sm:$0x3] %vm87_vm1, %v848_v58  ;;  %2379 = vmatmul.mubr.msk.f32.vlgmr.msra.gmra.mrb[10].mxu0 %vm115_vm2, %v848_v58 }
 0x366   :  { %2592 = vmatpush3.bf16.msra.mxu1 %v3050_v17  ;;  %2389 = vmatprep.mubr.msk.f32.mxu1 %vm2912_vm0, %v2913_v1 }
 0x367   :  { %2593 = vmatprep.subr.bf16.mxu1 %v2911_v0  ;;  %2598 = vmatpush3.bf16.msra.mxu0 %v3033_v5 }
 0x368   :  { %2599 = vmatprep.subr.bf16.mxu0 %v2911_v0  ;;  %2400 = vmatprep.mubr.msk.f32.mxu0 %vm2912_vm0, %v2913_v1 }
 0x36a   :  { %2595 = vmatpush3.bf16.msra.mxu1 %v3057_v21 }
 0x36b   :  { %2602 = vmatprep.subr.bf16.mxu1 %v2911_v0  ;;  %2601 = vmatpush3.bf16.msra.mxu0 %v3040_v12 }
 0x36c   :  { %2608 = vmatprep.subr.bf16.mxu0 %v2911_v0 }
 0x36d   :  { %2390 = vmatmul.mubr.msk.f32.vlgmr.msra.gmra.mrb[10].mxu1 %vm115_vm2, %v848_v58 }
 0x36e   :  { %2604 = vmatpush3.bf16.msra.mxu1 %v3042_v13  ;;  %2411 = vmatprep.mubr.msk.f32.mxu1 %vm2912_vm0, %v2913_v1 }
 0x36f   :  { %2605 = vmatprep.subr.bf16.mxu1 %v2911_v0 }
 0x372   :  { %2607 = vmatpush3.bf16.msra.mxu1 %v3046_v16 }
 0x373   :  { %2614 = vmatprep.subr.bf16.mxu1 %v2911_v0 }
 0x438   :  { %v920_v59 = vpop.f32.mrb[8].mxu1  ;;  %v990_v61 = vpop.f32.mrb[10].mxu0 }
 0x439   :  { %v921_v62 = vadd.f32 %v3081_v22, %v920_v59  ;;  %v2369_v63 = vpop.f32.mrb[9].mxu1  ;;  %v2380_v2 = vpop.f32.mrb[11].mxu0  ;;  %v991_v3 = vadd.f32 %v3086_v25, %v990_v61 }
 0x43b   :  { %v1066_v4 = vadd.f32 %v1065_v60, %v921_v62  ;;  %v1075_v8 = vadd.f32 %v1074_v6, %v991_v3  ;;  %v1549_v3 = vld [vmem:[#allocation2 + $0xa] sm:$0x3] }
 0x43d   :  { %v2118_v7 = vmul.f32 -1.442695, %v1066_v4  ;;  %v2119_v11 = vmul.f32 -1.442695, %v1075_v8 }
 0x43f   :  { %2711 = vpow2.f32 %v2118_v7 }
 0x440   :  { %v1060_v9 = vpop.f32.mrb[10].mxu1  ;;  %2713 = vpow2.f32 %v2119_v11  ;;  %v1558_v11 = vld [vmem:[#allocation5 + $0xa] sm:$0x3] }
 0x441   :  { %v2391_v10 = vpop.f32.mrb[11].mxu1  ;;  %v1061_v20 = vadd.f32 %v3093_v41, %v1060_v9 }
 0x449   :  { %v2712_v14 = vpop.eup %2711 }
 0x44a   :  { %v1070_v15 = vadd.f32 1.0, %v2712_v14  ;;  %v2714_v18 = vpop.eup %2713 }
 0x44b   :  { %v1079_v19 = vadd.f32 1.0, %v2714_v18 }
 0x44c   :  { %2715 = vrcp.f32 %v1070_v15 }
 0x44d   :  { %2717 = vrcp.f32 %v1079_v19 }
 0x456   :  { %v2716_v23 = vpop.eup %2715 }
 0x457   :  { %v1084_v26 = vmul.f32 %v2716_v23, %v1061_v20  ;;  %v2718_v28 = vpop.eup %2717 }
 0x458   :  { %v1087_v29 = vsub.f32 1.0, %v2718_v28  ;;  %v1089_v32 = vmul.f32 %v2718_v28, %v848_v58 }
 0x459   :  { %v1085_v27 = vadd.f32 %v1084_v26, %v1083_v24 }
 0x45b   :  { %2719 = vtanh.f32 %v1085_v27 }
 0x465   :  { %v2720_v30 = vpop.eup %2719 }
 0x466   :  { %v1088_v31 = vmul.f32 %v2720_v30, %v1087_v29  ;;  %v1567_v30 = vld [vmem:[#allocation7 + $0xa] sm:$0x3] }
 0x468   :  { %v1090_v33 = vadd.f32 %v1089_v32, %v1088_v31 }
 0x46a   :  { %2401 = vmatmul.mubr.msk.f32.vlgmr.msra.gmra.mrb[12].mxu0 %vm115_vm2, %v1090_v33  ;;  %1092 = vst.msk [vmem:[#allocation10 + $0x6] sm:$0x3] %vm87_vm1, %v1090_v33  ;;  %2412 = vmatmul.mubr.msk.f32.vlgmr.msra.gmra.mrb[12].mxu1 %vm115_vm2, %v1090_v33 }
 0x46b   :  { %2610 = vmatpush3.bf16.msra.mxu0 %v3050_v17  ;;  %2422 = vmatprep.mubr.msk.f32.mxu0 %vm2912_vm0, %v2913_v1 }
 0x46c   :  { %2611 = vmatprep.subr.bf16.mxu0 %v2911_v0  ;;  %2616 = vmatpush3.bf16.msra.mxu1 %v3033_v5 }
 0x46d   :  { %2617 = vmatprep.subr.bf16.mxu1 %v2911_v0  ;;  %2433 = vmatprep.mubr.msk.f32.mxu1 %vm2912_vm0, %v2913_v1 }
 0x46f   :  { %2613 = vmatpush3.bf16.msra.mxu0 %v3057_v21 }
 0x470   :  { %2620 = vmatprep.subr.bf16.mxu0 %v2911_v0  ;;  %2619 = vmatpush3.bf16.msra.mxu1 %v3040_v12 }
 0x471   :  { %2626 = vmatprep.subr.bf16.mxu1 %v2911_v0 }
 0x472   :  { %2423 = vmatmul.mubr.msk.f32.vlgmr.msra.gmra.mrb[14].mxu0 %vm115_vm2, %v1090_v33 }
 0x473   :  { %2622 = vmatpush3.bf16.msra.mxu0 %v3042_v13  ;;  %2444 = vmatprep.mubr.msk.f32.mxu0 %vm2912_vm0, %v2913_v1 }
 0x474   :  { %2623 = vmatprep.subr.bf16.mxu0 %v2911_v0 }
 0x477   :  { %2625 = vmatpush3.bf16.msra.mxu0 %v3046_v16 }
 0x478   :  { %2632 = vmatprep.subr.bf16.mxu0 %v2911_v0 }
 0x53d   :  { %v1162_v34 = vpop.f32.mrb[12].mxu0  ;;  %v1232_v36 = vpop.f32.mrb[12].mxu1 }
 0x53e   :  { %v1163_v37 = vadd.f32 %v3081_v22, %v1162_v34  ;;  %v2402_v38 = vpop.f32.mrb[13].mxu0  ;;  %v2413_v39 = vpop.f32.mrb[13].mxu1  ;;  %v1233_v40 = vadd.f32 %v3086_v25, %v1232_v36 }
 0x53f   :  { %v1791_v39 = vld [vmem:[#allocation2 + $0xc] sm:$0x3] }
 0x540   :  { %v1308_v42 = vadd.f32 %v1307_v35, %v1163_v37  ;;  %v1317_v45 = vadd.f32 %v1316_v43, %v1233_v40 }
 0x542   :  { %v2123_v44 = vmul.f32 -1.442695, %v1308_v42  ;;  %v2124_v48 = vmul.f32 -1.442695, %v1317_v45 }
 0x544   :  { %2721 = vpow2.f32 %v2123_v44 }
 0x545   :  { %v1302_v46 = vpop.f32.mrb[14].mxu0  ;;  %2723 = vpow2.f32 %v2124_v48 }
 0x546   :  { %v2424_v47 = vpop.f32.mrb[15].mxu0  ;;  %v1303_v53 = vadd.f32 %v3093_v41, %v1302_v46  ;;  %v1800_v46 = vld [vmem:[#allocation5 + $0xc] sm:$0x3] }
 0x54e   :  { %v2722_v49 = vpop.eup %2721 }
 0x54f   :  { %v1312_v50 = vadd.f32 1.0, %v2722_v49  ;;  %v2724_v51 = vpop.eup %2723 }
 0x550   :  { %v1321_v52 = vadd.f32 1.0, %v2724_v51 }
 0x551   :  { %2725 = vrcp.f32 %v1312_v50 }
 0x552   :  { %2727 = vrcp.f32 %v1321_v52 }
 0x55b   :  { %v2726_v54 = vpop.eup %2725 }
 0x55c   :  { %v1326_v56 = vmul.f32 %v2726_v54, %v1303_v53  ;;  %v2728_v58 = vpop.eup %2727 }
 0x55d   :  { %v1329_v59 = vsub.f32 1.0, %v2728_v58  ;;  %v1331_v62 = vmul.f32 %v2728_v58, %v1090_v33 }
 0x55e   :  { %v1327_v57 = vadd.f32 %v1326_v56, %v1325_v55  ;;  %v1809_v56 = vld [vmem:[#allocation7 + $0xc] sm:$0x3] }
 0x560   :  { %2729 = vtanh.f32 %v1327_v57 }
 0x56a   :  { %v2730_v60 = vpop.eup %2729 }
 0x56b   :  { %v1330_v61 = vmul.f32 %v2730_v60, %v1329_v59 }
 0x56d   :  { %v1332_v63 = vadd.f32 %v1331_v62, %v1330_v61 }
 0x56f   :  { %2434 = vmatmul.mubr.msk.f32.vlgmr.msra.gmra.mrb[14].mxu1 %vm115_vm2, %v1332_v63  ;;  %1334 = vst.msk [vmem:[#allocation10 + $0x8] sm:$0x3] %vm87_vm1, %v1332_v63  ;;  %2445 = vmatmul.mubr.msk.f32.vlgmr.msra.gmra.mrb[16].mxu0 %vm115_vm2, %v1332_v63 }
 0x570   :  { %2628 = vmatpush3.bf16.msra.mxu1 %v3050_v17  ;;  %2455 = vmatprep.mubr.msk.f32.mxu1 %vm2912_vm0, %v2913_v1 }
 0x571   :  { %2629 = vmatprep.subr.bf16.mxu1 %v2911_v0  ;;  %2634 = vmatpush3.bf16.msra.mxu0 %v3033_v5 }
 0x572   :  { %2635 = vmatprep.subr.bf16.mxu0 %v2911_v0  ;;  %2466 = vmatprep.mubr.msk.f32.mxu0 %vm2912_vm0, %v2913_v1 }
 0x574   :  { %2631 = vmatpush3.bf16.msra.mxu1 %v3057_v21 }
 0x575   :  { %2638 = vmatprep.subr.bf16.mxu1 %v2911_v0  ;;  %2637 = vmatpush3.bf16.msra.mxu0 %v3040_v12 }
 0x576   :  { %2644 = vmatprep.subr.bf16.mxu0 %v2911_v0 }
 0x577   :  { %2456 = vmatmul.mubr.msk.f32.vlgmr.msra.gmra.mrb[16].mxu1 %vm115_vm2, %v1332_v63 }
 0x578   :  { %2640 = vmatpush3.bf16.msra.mxu1 %v3042_v13  ;;  %2477 = vmatprep.mubr.msk.f32.mxu1 %vm2912_vm0, %v2913_v1 }
 0x579   :  { %2641 = vmatprep.subr.bf16.mxu1 %v2911_v0 }
 0x57c   :  { %2643 = vmatpush3.bf16.msra.mxu1 %v3046_v16 }
 0x57d   :  { %2650 = vmatprep.subr.bf16.mxu1 %v2911_v0 }
 0x642   :  { %v1404_v2 = vpop.f32.mrb[14].mxu1  ;;  %v1474_v4 = vpop.f32.mrb[16].mxu0 }
 0x643   :  { %v1405_v6 = vadd.f32 %v3081_v22, %v1404_v2  ;;  %v2435_v7 = vpop.f32.mrb[15].mxu1  ;;  %v2446_v8 = vpop.f32.mrb[17].mxu0  ;;  %v1475_v9 = vadd.f32 %v3086_v25, %v1474_v4  ;;  %v2033_v4 = vld [vmem:[#allocation2 + $0xe] sm:$0x3] }
 0x645   :  { %v1550_v10 = vadd.f32 %v1549_v3, %v1405_v6  ;;  %v1559_v15 = vadd.f32 %v1558_v11, %v1475_v9 }
 0x647   :  { %v2128_v14 = vmul.f32 -1.442695, %v1550_v10  ;;  %v2129_v20 = vmul.f32 -1.442695, %v1559_v15 }
 0x649   :  { %2731 = vpow2.f32 %v2128_v14 }
 0x64a   :  { %v1544_v18 = vpop.f32.mrb[16].mxu1  ;;  %2733 = vpow2.f32 %v2129_v20 }
 0x64b   :  { %v2457_v19 = vpop.f32.mrb[17].mxu1  ;;  %v1545_v28 = vadd.f32 %v3093_v41, %v1544_v18 }
 0x653   :  { %v2732_v23 = vpop.eup %2731 }
 0x654   :  { %v1554_v24 = vadd.f32 1.0, %v2732_v23  ;;  %v2734_v26 = vpop.eup %2733 }
 0x655   :  { %v1563_v27 = vadd.f32 1.0, %v2734_v26  ;;  %v2051_v26 = vld [vmem:[#allocation7 + $0xe] sm:$0x3] }
 0x656   :  { %2735 = vrcp.f32 %v1554_v24 }
 0x657   :  { %2737 = vrcp.f32 %v1563_v27 }
 0x660   :  { %v2736_v29 = vpop.eup %2735 }
 0x661   :  { %v1568_v31 = vmul.f32 %v2736_v29, %v1545_v28  ;;  %v2738_v33 = vpop.eup %2737 }
 0x662   :  { %v1571_v34 = vsub.f32 1.0, %v2738_v33  ;;  %v1573_v37 = vmul.f32 %v2738_v33, %v1332_v63 }
 0x663   :  { %v1569_v32 = vadd.f32 %v1568_v31, %v1567_v30 }
 0x665   :  { %2739 = vtanh.f32 %v1569_v32 }
 0x66f   :  { %v2740_v35 = vpop.eup %2739 }
 0x670   :  { %v1572_v36 = vmul.f32 %v2740_v35, %v1571_v34 }
 0x672   :  { %v1574_v38 = vadd.f32 %v1573_v37, %v1572_v36 }
 0x674   :  { %2467 = vmatmul.mubr.msk.f32.vlgmr.msra.gmra.mrb[18].mxu0 %vm115_vm2, %v1574_v38  ;;  %1576 = vst.msk [vmem:[#allocation10 + $0xa] sm:$0x3] %vm87_vm1, %v1574_v38  ;;  %2478 = vmatmul.mubr.msk.f32.vlgmr.msra.gmra.mrb[18].mxu1 %vm115_vm2, %v1574_v38 }
 0x675   :  { %2646 = vmatpush3.bf16.msra.mxu0 %v3050_v17  ;;  %2488 = vmatprep.mubr.msk.f32.mxu0 %vm2912_vm0, %v2913_v1 }
 0x676   :  { %2647 = vmatprep.subr.bf16.mxu0 %v2911_v0  ;;  %2652 = vmatpush3.bf16.msra.mxu1 %v3033_v5 }
 0x677   :  { %2653 = vmatprep.subr.bf16.mxu1 %v2911_v0  ;;  %2499 = vmatprep.mubr.msk.f32.mxu1 %vm2912_vm0, %v2913_v1 }
 0x679   :  { %2649 = vmatpush3.bf16.msra.mxu0 %v3057_v21 }
 0x67a   :  { %2656 = vmatprep.subr.bf16.mxu0 %v2911_v0  ;;  %2655 = vmatpush3.bf16.msra.mxu1 %v3040_v12 }
 0x67b   :  { %2662 = vmatprep.subr.bf16.mxu1 %v2911_v0 }
 0x67c   :  { %2489 = vmatmul.mubr.msk.f32.vlgmr.msra.gmra.mrb[20].mxu0 %vm115_vm2, %v1574_v38 }
 0x67d   :  { %2658 = vmatpush3.bf16.msra.mxu0 %v3042_v13  ;;  %2510 = vmatprep.mubr.msk.f32.mxu0 %vm2912_vm0, %v2913_v1 }
 0x67e   :  { %2659 = vmatprep.subr.bf16.mxu0 %v2911_v0 }
 0x681   :  { %2661 = vmatpush3.bf16.msra.mxu0 %v3046_v16 }
 0x747   :  { %v1646_v5 = vpop.f32.mrb[18].mxu0  ;;  %v1716_v40 = vpop.f32.mrb[18].mxu1 }
 0x748   :  { %v1647_v42 = vadd.f32 %v3081_v22, %v1646_v5  ;;  %v2468_v43 = vpop.f32.mrb[19].mxu0  ;;  %v2479_v12 = vpop.f32.mrb[19].mxu1  ;;  %v1717_v44 = vadd.f32 %v3086_v25, %v1716_v40 }
 0x74a   :  { %v1792_v45 = vadd.f32 %v1791_v39, %v1647_v42  ;;  %v1801_v13 = vadd.f32 %v1800_v46, %v1717_v44 }
 0x74c   :  { %v2133_v47 = vmul.f32 -1.442695, %v1792_v45  ;;  %v2134_v50 = vmul.f32 -1.442695, %v1801_v13 }
 0x74e   :  { %2741 = vpow2.f32 %v2133_v47 }
 0x74f   :  { %v1786_v48 = vpop.f32.mrb[20].mxu0  ;;  %2743 = vpow2.f32 %v2134_v50 }
 0x750   :  { %v2490_v49 = vpop.f32.mrb[21].mxu0  ;;  %v1787_v54 = vadd.f32 %v3093_v41, %v1786_v48 }
 0x758   :  { %v2742_v51 = vpop.eup %2741 }
 0x759   :  { %v1796_v16 = vadd.f32 1.0, %v2742_v51  ;;  %v2744_v52 = vpop.eup %2743 }
 0x75a   :  { %v1805_v53 = vadd.f32 1.0, %v2744_v52 }
 0x75b   :  { %2745 = vrcp.f32 %v1796_v16 }
 0x75c   :  { %2747 = vrcp.f32 %v1805_v53 }
 0x765   :  { %v2746_v55 = vpop.eup %2745 }
 0x766   :  { %v1810_v57 = vmul.f32 %v2746_v55, %v1787_v54  ;;  %v2748_v59 = vpop.eup %2747 }
 0x767   :  { %v1813_v60 = vsub.f32 1.0, %v2748_v59  ;;  %v1815_v63 = vmul.f32 %v2748_v59, %v1574_v38 }
 0x768   :  { %v1811_v58 = vadd.f32 %v1810_v57, %v1809_v56 }
 0x76a   :  { %2749 = vtanh.f32 %v1811_v58 }
 0x774   :  { %v2750_v61 = vpop.eup %2749 }
 0x775   :  { %v1814_v62 = vmul.f32 %v2750_v61, %v1813_v60 }
 0x777   :  { %v1816_v2 = vadd.f32 %v1815_v63, %v1814_v62 }
 0x779   :  { %2500 = vmatmul.mubr.msk.f32.vlgmr.msra.gmra.mrb[20].mxu1 %vm115_vm2, %v1816_v2  ;;  %1818 = vst.msk [vmem:[#allocation10 + $0xc] sm:$0x3] %vm87_vm1, %v1816_v2  ;;  %2511 = vmatmul.mubr.msk.f32.vlgmr.msra.gmra.mrb[22].mxu0 %vm115_vm2, %v1816_v2 }
 0x77a   :  { %2664 = vmatpush3.bf16.msra.mxu1 %v3050_v17  ;;  %2521 = vmatprep.mubr.msk.f32.mxu1 %vm2912_vm0, %v2913_v1  ;;  %v2042_v17 = vld [vmem:[#allocation5 + $0xe] sm:$0x3] }
 0x77b   :  { %2665 = vmatprep.subr.bf16.mxu1 %v2911_v0 }
 0x77e   :  { %2667 = vmatpush3.bf16.msra.mxu1 %v3057_v21 }
 0x781   :  { %2522 = vmatmul.mubr.msk.f32.vlgmr.msra.gmra.mrb[22].mxu1 %vm115_vm2, %v1816_v2 }
 0x84c   :  { %v1888_v3 = vpop.f32.mrb[20].mxu1  ;;  %v1958_v6 = vpop.f32.mrb[22].mxu0 }
 0x84d   :  { %v1889_v7 = vadd.f32 %v3081_v22, %v1888_v3  ;;  %v2501_v8 = vpop.f32.mrb[21].mxu1  ;;  %v2512_v9 = vpop.f32.mrb[23].mxu0  ;;  %v1959_v10 = vadd.f32 %v3086_v25, %v1958_v6 }
 0x84f   :  { %v2034_v11 = vadd.f32 %v2033_v4, %v1889_v7  ;;  %v2043_v15 = vadd.f32 %v2042_v17, %v1959_v10 }
 0x851   :  { %v2138_v14 = vmul.f32 -1.442695, %v2034_v11  ;;  %v2139_v18 = vmul.f32 -1.442695, %v2043_v15 }
 0x853   :  { %2751 = vpow2.f32 %v2138_v14 }
 0x854   :  { %v2028_v1 = vpop.f32.mrb[22].mxu1  ;;  %2753 = vpow2.f32 %v2139_v18 }
 0x855   :  { %v2523_v0 = vpop.f32.mrb[23].mxu1  ;;  %v2029_v22 = vadd.f32 %v3093_v41, %v2028_v1 }
 0x85d   :  { %v2752_v21 = vpop.eup %2751 }
 0x85e   :  { %v2038_v19 = vadd.f32 1.0, %v2752_v21  ;;  %v2754_v20 = vpop.eup %2753 }
 0x85f   :  { %v2047_v23 = vadd.f32 1.0, %v2754_v20 }
 0x860   :  { %2755 = vrcp.f32 %v2038_v19 }
 0x861   :  { %2757 = vrcp.f32 %v2047_v23 }
 0x86a   :  { %v2756_v24 = vpop.eup %2755 }
 0x86b   :  { %v2052_v25 = vmul.f32 %v2756_v24, %v2029_v22  ;;  %v2758_v28 = vpop.eup %2757 }
 0x86c   :  { %v2055_v29 = vsub.f32 1.0, %v2758_v28  ;;  %v2057_v31 = vmul.f32 %v2758_v28, %v1816_v2 }
 0x86d   :  { %v2053_v27 = vadd.f32 %v2052_v25, %v2051_v26 }
 0x86f   :  { %2759 = vtanh.f32 %v2053_v27 }
 0x879   :  { %v2760_v30 = vpop.eup %2759 }
 0x87a   :  { %v2056_v32 = vmul.f32 %v2760_v30, %v2055_v29 }
 0x87c   :  { %v2058_v33 = vadd.f32 %v2057_v31, %v2056_v32 }
 0x87e   :  { %2060 = vst.msk [vmem:[#allocation10 + $0xe] sm:$0x3] %vm87_vm1, %v2058_v33  ;;  %2061 = vst.msk [vmem:[#allocation11] sm:$0x3] %vm87_vm1, %v2058_v33 }
 0x87f   :  { %2860 = shalt.err (!%p2857_p8)
}
 0x880   :  { %s2861_s18 = scalar_lea.hbm %s3292_s6, 256 }
 0x881   :  { %p2862_p9 = scmp.ne.s32.totalorder %s3292_s6, %s2861_s18  ;;  %p2865_p10 = scmp.lt.u32.totalorder %s2861_s18, %s3292_s6 }
 0x883   :  { %p2867_p11 = pnand %p2865_p10, %p2862_p9 }
 0x885   :  { %2870 = shalt.err (!%p2867_p11)
}
 0x886   :  { %2073 = dma.vmem_to_hbm [thread:$0]  %s2068_s12, 256, %s3292_s6, [#allocation4], %s2905_s13, %s2905_s13, %s2906_s14  }
 0x887   :  { %s2871_s1 = scalar_lea.vmem %s2081_s16, 32  ;;  %p2876_p13 = scmp.lt.s32.totalorder %s2081_s16, %s2081_s16 }
 0x888   :  { %p2872_p12 = scmp.ne.s32.totalorder %s2081_s16, %s2871_s1  ;;  %p2877_p0 = scmp.lt.s32.totalorder %s2871_s1, %s2871_s1 }
 0x88a   :  { %p2878_p1 = por %p2877_p0, %p2876_p13 }
 0x88c   :  { %p2879_p2 = pnand %p2878_p1, %p2872_p12 }
 0x88e   :  { %2882 = shalt.err (!%p2879_p2)
}
 0x88f   :  { %s2883_s26 = scalar_lea.hbm %s3293_s7, 32 }
 0x890   :  { %p2884_p3 = scmp.ne.s32.totalorder %s3293_s7, %s2883_s26  ;;  %p2887_p4 = scmp.lt.u32.totalorder %s2883_s26, %s3293_s7 }
 0x892   :  { %p2889_p5 = pnand %p2887_p4, %p2884_p3 }
 0x894   :  { %2892 = shalt.err (!%p2889_p5)
}
 0x895   :  { %2083 = dma.vmem_to_hbm [thread:$0]  %s2081_s16, 32, %s3293_s7, [#allocation12]  }
 0x896   :  { %2899 = dma.done.wait [#allocation4], 256  }
 0x897   :  { %2900 = vsyncadd [#allocation4], 4294967040 }
 0x898   :  { %2901 = dma.done.wait [#allocation12], 32  }
 0x899   :  { %2902 = vsyncadd [#allocation12], 4294967264 }
 0x89a   :  { %2090 = vsyncpa [#allocation3], 1 }
 0x89b   :  { %2091 = vsyncpa [#allocation6], 1 }
 0x89c   :  { %2092 = vsyncpa [#allocation9], 1 }
 0x89d   :  { %2093 = vsyncpa [#allocation4], 1 }
 0x89e   :  { %2094 = vsyncpa [#allocation12], 1 }

</bundles_post_ra>
